<compile_context>
chip_gen: v6e
topology: v6e:2x2x1
jax: 0.10.0
libtpu: 0.0.40
codegen_flags: <defaults>
</compile_context>

<pallas_src>
import functools
import math

import jax
import jax.numpy as jnp
import numpy as np
from jax import lax
from jax.experimental import pallas as pl
from jax.experimental.pallas import tpu as pltpu

D_MODEL = 80
NHEAD = 2
HEAD_DIM = D_MODEL // NHEAD          # 40
D_FF = 256
LN_EPS = 1e-5
MXU_DTYPE = jnp.bfloat16             # matmul operand dtype (accumulation is f32)
OUT_W = 128                          # lane-dense combined output width
VMEM_LIMIT_BYTES = 48 * 1024 * 1024  # explicit scoped-VMEM cap (safe on v5e..v7x)

# Row indices of the packed (7, D_MODEL) per-feature vector table.
_LN1_G, _LN1_B, _LN2_G, _LN2_B, _BO, _B2, _PB1 = range(7)

# Single-TensorCore generations (grid axis is a serial loop there, so no
# reason to force >= 2 grid steps).
_SINGLE_TC_TAGS = ("v5e", "v5 lite", "v5lite", "v6e", "v6 lite", "v6lite", "trillium")


def _is_single_tensorcore_chip():
    try:
        kind = jax.devices()[0].device_kind.lower()
    except Exception:
        return False
    return any(t in kind for t in _SINGLE_TC_TAGS)


def _layernorm(x, g, b):
    mu = jnp.mean(x, axis=-1, keepdims=True)
    var = jnp.mean((x - mu) ** 2, axis=-1, keepdims=True)
    return (x - mu) * lax.rsqrt(var + LN_EPS) * g + b


def _encoder_kernel(x_ref, pe_ref, wqkv_ref, bqkv_ref, wo_ref,
                    w1_ref, b1_ref, w2_ref, pw1_ref, pw2_ref, pb2_ref,
                    vecs_ref, out_ref):
    """One grid step == one block of BBLK batch elements.  x_ref: (BBLK, T, D)."""
    f32 = jnp.float32
    mxu = MXU_DTYPE
    bblk, T, D = x_ref.shape
    M = bblk * T
    hd = HEAD_DIM
    scale = 1.0 / math.sqrt(hd)

    def mm(a, w):  # MXU matmul, f32 accumulation
        return jnp.dot(a, w, preferred_element_type=f32)

    vecs = vecs_ref[...]                                   # (7, D) f32

    # ---- positional encoding: pe[b] broadcast over time (faithful to torch) ----
    h = x_ref[...] + pe_ref[...]                           # (BBLK, T, D) + (BBLK, 1, D)
    h2 = h.reshape(M, D)                                   # layout-free: T % 8 == 0
    h2b = h2.astype(mxu)                                   # cast once

    # ---- fused QKV projection: one (M, 3*D) matmul filling the MXU N dim ----
    qkv = mm(h2b, wqkv_ref[...]) + bqkv_ref[...]           # (M, 240) f32

    # ---- multi-head self-attention (nhead=2), eval mode (no dropout) ----
    ctx_heads = []
    for head in range(NHEAD):                              # static unroll, 2 heads
        lo = head * hd
        q3 = qkv[:, lo:lo + hd].reshape(bblk, T, hd).astype(mxu)
        k3 = qkv[:, D + lo:D + lo + hd].reshape(bblk, T, hd).astype(mxu)
        v3 = qkv[:, 2 * D + lo:2 * D + lo + hd].reshape(bblk, T, hd).astype(mxu)

        # Batched attention over the whole batch block; softmax stays f32.
        s = jnp.einsum('bqd,bkd->bqk', q3, k3,
                       preferred_element_type=f32) * scale     # (BBLK, T, T)
        s = s - jnp.max(s, axis=-1, keepdims=True)
        p = jnp.exp(s)
        p = p * pl.reciprocal(jnp.sum(p, axis=-1, keepdims=True), approx=True)
        ctx = jnp.einsum('bqk,bkd->bqd', p.astype(mxu), v3,
                         preferred_element_type=f32)           # (BBLK, T, hd)
        ctx_heads.append(ctx.reshape(M, hd))

    # ---- fused output projection: concat heads along lanes, one matmul ----
    ctx_cat = jnp.concatenate(ctx_heads, axis=-1).astype(mxu)  # (M, D)
    attn = mm(ctx_cat, wo_ref[...]) + vecs[_BO:_BO + 1]

    # ---- residual + LayerNorm1 ----
    h2 = _layernorm(h2 + attn, vecs[_LN1_G:_LN1_G + 1], vecs[_LN1_B:_LN1_B + 1])

    # ---- feed-forward (ReLU) + residual + LayerNorm2 ----
    ff = jnp.maximum(mm(h2.astype(mxu), w1_ref[...]) + b1_ref[...], 0.0)   # (M, DFF)
    ff = mm(ff.astype(mxu), w2_ref[...]) + vecs[_B2:_B2 + 1]
    h2 = _layernorm(h2 + ff, vecs[_LN2_G:_LN2_G + 1], vecs[_LN2_B:_LN2_B + 1])

    # ---- stats = mean over time; pred head batched over the whole block ----
    stats = jnp.mean(h2.reshape(bblk, T, D), axis=1)           # (BBLK, D)
    p1 = jnp.maximum(mm(stats.astype(mxu), pw1_ref[...]) + vecs[_PB1:_PB1 + 1], 0.0)
    p2 = mm(p1, pw2_ref[...]) + pb2_ref[...]                   # (BBLK, 1), tiny, f32
    sig = jax.nn.sigmoid(p2)

    # ---- lane-dense combined output: [stats | pred | zero pad] -> 128 lanes ----
    pad = jnp.zeros((bblk, OUT_W - D - 1), f32)
    out_ref[0] = jnp.concatenate([stats, sig, pad], axis=-1)


def _pick_block_batch(B, T, target_rows=4096):
    """Batch-block size: fill the MXU M dimension (BBLK*T ~ target_rows).
    On multi-TensorCore chips keep >= 2 parallel grid steps so both TCs get
    work; on single-TC chips (v5e/v6e) use the biggest block that fits.
    A score cap keeps the (BBLK, T, T) softmax buffer <= ~8 MiB f32."""
    rows_cap = max(1, target_rows // max(T, 1))
    score_cap = max(1, (2 << 20) // max(T * T, 1))
    bblk = max(1, min(B, rows_cap, score_cap))
    if B >= 2 and not _is_single_tensorcore_chip():
        bblk = min(bblk, -(-B // 2))      # keep at least 2 grid steps (dual-TC)
    return max(1, bblk)


@functools.partial(jax.jit, static_argnames=("block_batch",))
def expression_encoder(feature, params, block_batch=None):
    """feature: (B, T, D_MODEL) f32 -> (out (B, 1), stats (B, D_MODEL))."""
    B, T, D = feature.shape
    assert D == D_MODEL
    # TODO(synk): support T % 8 != 0 (needs time padding + attention masking);
    # T being a sublane multiple keeps the in-kernel (BBLK,T,D)<->(BBLK*T,D)
    # reshapes layout-free.
    assert T % 8 == 0, "sequence length must be a multiple of 8"

    bblk = block_batch if block_batch is not None else _pick_block_batch(B, T)
    nblk = -(-B // bblk)
    Bp = nblk * bblk
    if Bp != B:                                   # pad batch; padded rows discarded
        feature = jnp.concatenate(
            [feature, jnp.zeros((Bp - B, T, D), feature.dtype)], axis=0)

    assert Bp <= params["pe"].shape[0]
    pe3 = params["pe"][:Bp].reshape(Bp, 1, D)     # per-batch-index PE (see header)

    # ---- host-side weight packing / bf16 casting (once, under jit) ----
    mxu = MXU_DTYPE
    w_qkv = jnp.concatenate([params["wq"], params["wk"], params["wv"]],
                            axis=1).astype(mxu)                          # (D, 3D)
    b_qkv = jnp.concatenate([params["bq"], params["bk"], params["bv"]],
                            axis=1)                                      # (1, 3D) f32
    wo = params["wo"].astype(mxu)                                        # (D, D)
    vecs = jnp.concatenate([params["ln1_g"], params["ln1_b"],
                            params["ln2_g"], params["ln2_b"],
                            params["bo"], params["b2"], params["pb1"]], axis=0)  # (7,D)

    weight_args = [
        w_qkv, b_qkv, wo,
        params["w1"].astype(mxu), params["b1"], params["w2"].astype(mxu),
        params["pw1"].astype(mxu), params["pw2"], params["pb2"],
        vecs,
    ]

    def resident(a):  # whole (small) weight array resident in VMEM every grid step
        return pl.BlockSpec(a.shape, lambda b, nd=a.ndim: (0,) * nd)

    in_specs = ([pl.BlockSpec((bblk, T, D), lambda b: (b, 0, 0)),   # x, per block
                 pl.BlockSpec((bblk, 1, D), lambda b: (b, 0, 0))]   # pe, per block
                + [resident(a) for a in weight_args])
    out_specs = pl.BlockSpec((1, bblk, OUT_W), lambda b: (b, 0, 0))  # stats|pred slab

    combo = pl.pallas_call(
        _encoder_kernel,
        grid=(nblk,),
        in_specs=in_specs,
        out_specs=out_specs,
        out_shape=jax.ShapeDtypeStruct((nblk, bblk, OUT_W), jnp.float32),
        compiler_params=pltpu.CompilerParams(
            dimension_semantics=("parallel",),
            vmem_limit_bytes=VMEM_LIMIT_BYTES),
    )(feature, pe3, *weight_args)

    combo = combo.reshape(Bp, OUT_W)
    stats = combo[:B, :D]
    out = combo[:B, D:D + 1]
    return out, stats


def init_params(key, max_len=5000):
    ks = jax.random.split(key, 16)

    def w(k, shape, scale=0.05):
        return jax.random.normal(k, shape, jnp.float32) * scale

    params = dict(
        # NOTE: self.prenet exists in __init__ but is unused by forward.
        wq=w(ks[0], (D_MODEL, D_MODEL)), bq=w(ks[1], (1, D_MODEL)),
        wk=w(ks[2], (D_MODEL, D_MODEL)), bk=w(ks[3], (1, D_MODEL)),
        wv=w(ks[4], (D_MODEL, D_MODEL)), bv=w(ks[5], (1, D_MODEL)),
        wo=w(ks[6], (D_MODEL, D_MODEL)), bo=w(ks[7], (1, D_MODEL)),
        ln1_g=jnp.ones((1, D_MODEL), jnp.float32),
        ln1_b=jnp.zeros((1, D_MODEL), jnp.float32),
        w1=w(ks[8], (D_MODEL, D_FF)), b1=w(ks[9], (1, D_FF)),
        w2=w(ks[10], (D_FF, D_MODEL)), b2=w(ks[11], (1, D_MODEL)),
        ln2_g=jnp.ones((1, D_MODEL), jnp.float32),
        ln2_b=jnp.zeros((1, D_MODEL), jnp.float32),
        pw1=w(ks[12], (D_MODEL, D_MODEL)), pb1=w(ks[13], (1, D_MODEL)),
        pw2=w(ks[14], (D_MODEL, 1)), pb2=w(ks[15], (1, 1)),
    )
    # PositionalEncoding buffer, identical to the PyTorch construction.
    position = jnp.arange(max_len, dtype=jnp.float32)[:, None]
    div_term = jnp.exp(jnp.arange(0, D_MODEL, 2, dtype=jnp.float32)
                       * (-math.log(10000.0) / D_MODEL))
    pe = jnp.zeros((max_len, D_MODEL), jnp.float32)
    pe = pe.at[:, 0::2].set(jnp.sin(position * div_term))
    pe = pe.at[:, 1::2].set(jnp.cos(position * div_term))
    params["pe"] = pe   # torch buffer is (max_len,1,D); forward uses pe[:B]
    return params


def reference(feature, params):
    """Pure-JAX f32 mirror of the PyTorch forward (eval mode)."""
    B, T, D = feature.shape
    hd = D // NHEAD

    h = feature + params["pe"][:B][:, None, :]
    q = h @ params["wq"] + params["bq"]
    k = h @ params["wk"] + params["bk"]
    v = h @ params["wv"] + params["bv"]
    qh = q.reshape(B, T, NHEAD, hd).transpose(0, 2, 1, 3)
    kh = k.reshape(B, T, NHEAD, hd).transpose(0, 2, 1, 3)
    vh = v.reshape(B, T, NHEAD, hd).transpose(0, 2, 1, 3)
    s = jnp.einsum("bhqd,bhkd->bhqk", qh, kh) / math.sqrt(hd)
    p = jax.nn.softmax(s, axis=-1)
    o = jnp.einsum("bhqk,bhkd->bhqd", p, vh).transpose(0, 2, 1, 3).reshape(B, T, D)
    h = _layernorm(h + (o @ params["wo"] + params["bo"]),
                   params["ln1_g"], params["ln1_b"])
    ff = jnp.maximum(h @ params["w1"] + params["b1"], 0.0) @ params["w2"] + params["b2"]
    h = _layernorm(h + ff, params["ln2_g"], params["ln2_b"])
    stats = h.mean(axis=1)
    p1 = jnp.maximum(stats @ params["pw1"] + params["pb1"], 0.0)
    out = jax.nn.sigmoid(p1 @ params["pw2"] + params["pb2"])
    return out, stats


def _check(out, stats, ref_out, ref_stats, B):
    assert out.shape == (B, 1) and stats.shape == (B, D_MODEL)
    # bf16 MXU operands (f32 accumulation) + approx softmax reciprocal ->
    # compare against the f32 reference at a bf16-appropriate tolerance.
    out_np, stats_np = np.asarray(out), np.asarray(stats)
    ref_out_np, ref_stats_np = np.asarray(ref_out), np.asarray(ref_stats)
    assert np.allclose(out_np, ref_out_np, atol=2e-2, rtol=2e-2), \
        float(np.max(np.abs(out_np - ref_out_np)))
    assert np.allclose(stats_np, ref_stats_np, atol=2e-2, rtol=2e-2), \
        float(np.max(np.abs(stats_np - ref_stats_np)))


if __name__ == "__main__":
    B, T = 5, 8
    key = jax.random.PRNGKey(0)
    k_feat, k_param = jax.random.split(key)
    feature = jax.random.normal(k_feat, (B, T, D_MODEL), jnp.float32)
    params = init_params(k_param)
    ref_out, ref_stats = reference(feature, params)

    # Auto block size (single large block on single-TC chips, >=2 steps on v7x).
    out, stats = expression_encoder(feature, params)
    jax.block_until_ready((out, stats))
    _check(out, stats, ref_out, ref_stats, B)

    # Explicit small block: exercises the multi-step grid + batch-padding path
    # regardless of which TPU generation runs the test.
    out2, stats2 = expression_encoder(feature, params, block_batch=2)
    jax.block_until_ready((out2, stats2))
    _check(out2, stats2, ref_out, ref_stats, B)

    print("KERNEL_OK")
</pallas_src>

<mosaic_0001>
module attributes {stable_mosaic.version = 11 : i64} {
  func.func @_encoder_kernel(%arg0: i32, %arg1: memref<3x8x80xf32, #tpu.memory_space<vmem>>, %arg2: memref<3x1x80xf32, #tpu.memory_space<vmem>>, %arg3: memref<80x240xbf16, #tpu.memory_space<vmem>>, %arg4: memref<1x240xf32, #tpu.memory_space<vmem>>, %arg5: memref<80x80xbf16, #tpu.memory_space<vmem>>, %arg6: memref<80x256xbf16, #tpu.memory_space<vmem>>, %arg7: memref<1x256xf32, #tpu.memory_space<vmem>>, %arg8: memref<256x80xbf16, #tpu.memory_space<vmem>>, %arg9: memref<80x80xbf16, #tpu.memory_space<vmem>>, %arg10: memref<80x1xf32, #tpu.memory_space<vmem>>, %arg11: memref<1x1xf32, #tpu.memory_space<vmem>>, %arg12: memref<7x80xf32, #tpu.memory_space<vmem>>, %arg13: memref<1x3x128xf32, #tpu.memory_space<vmem>>) attributes {dimension_semantics = [#tpu.dimension_semantics<parallel>], iteration_bounds = array<i64: 2>, scalar_prefetch = 0 : i64, scratch_operands = 0 : i64, tpu.core_type = #tpu.core_type<tc>, window_params = [{transform_indices = @transform_0, window_bounds = array<i64: 3, 8, 80>}, {transform_indices = @transform_1, window_bounds = array<i64: 3, 1, 80>}, {pipeline_mode = #tpu.pipeline_mode<synchronous>, transform_indices = @transform_2, window_bounds = array<i64: 80, 240>}, {pipeline_mode = #tpu.pipeline_mode<synchronous>, transform_indices = @transform_3, window_bounds = array<i64: 1, 240>}, {pipeline_mode = #tpu.pipeline_mode<synchronous>, transform_indices = @transform_4, window_bounds = array<i64: 80, 80>}, {pipeline_mode = #tpu.pipeline_mode<synchronous>, transform_indices = @transform_5, window_bounds = array<i64: 80, 256>}, {pipeline_mode = #tpu.pipeline_mode<synchronous>, transform_indices = @transform_6, window_bounds = array<i64: 1, 256>}, {pipeline_mode = #tpu.pipeline_mode<synchronous>, transform_indices = @transform_7, window_bounds = array<i64: 256, 80>}, {pipeline_mode = #tpu.pipeline_mode<synchronous>, transform_indices = @transform_8, window_bounds = array<i64: 80, 80>}, {pipeline_mode = #tpu.pipeline_mode<synchronous>, transform_indices = @transform_9, window_bounds = array<i64: 80, 1>}, {pipeline_mode = #tpu.pipeline_mode<synchronous>, transform_indices = @transform_10, window_bounds = array<i64: 1, 1>}, {pipeline_mode = #tpu.pipeline_mode<synchronous>, transform_indices = @transform_11, window_bounds = array<i64: 7, 80>}, {transform_indices = @transform_12, window_bounds = array<i64: 1, 3, 128>}]} {
    %c0 = arith.constant 0 : index
    %c0_0 = arith.constant 0 : index
    %0 = vector.load %arg12[%c0, %c0_0] : memref<7x80xf32, #tpu.memory_space<vmem>>, vector<7x80xf32>
    %c0_1 = arith.constant 0 : index
    %c0_2 = arith.constant 0 : index
    %c0_3 = arith.constant 0 : index
    %1 = vector.load %arg1[%c0_1, %c0_2, %c0_3] : memref<3x8x80xf32, #tpu.memory_space<vmem>>, vector<3x8x80xf32>
    %c0_4 = arith.constant 0 : index
    %c0_5 = arith.constant 0 : index
    %c0_6 = arith.constant 0 : index
    %2 = vector.load %arg2[%c0_4, %c0_5, %c0_6] : memref<3x1x80xf32, #tpu.memory_space<vmem>>, vector<3x1x80xf32>
    %3 = vector.broadcast %2 : vector<3x1x80xf32> to vector<3x8x80xf32>
    %4 = arith.addf %1, %3 : vector<3x8x80xf32>
    %5 = vector.shape_cast %4 : vector<3x8x80xf32> to vector<24x80xf32>
    %6 = arith.truncf %5 : vector<24x80xf32> to vector<24x80xbf16>
    %c0_7 = arith.constant 0 : index
    %c0_8 = arith.constant 0 : index
    %7 = vector.load %arg3[%c0_7, %c0_8] : memref<80x240xbf16, #tpu.memory_space<vmem>>, vector<80x240xbf16>
    %cst = arith.constant dense<0.000000e+00> : vector<24x240xf32>
    %8 = tpu.matmul %6, %7, %cst {dimension_numbers = #tpu.dot_dimension_numbers<[1], [0], [0], [1], [0, 0, 1, 1], [], []>} : vector<24x80xbf16>, vector<80x240xbf16>, vector<24x240xf32> -> vector<24x240xf32>
    %c0_9 = arith.constant 0 : index
    %c0_10 = arith.constant 0 : index
    %9 = vector.load %arg4[%c0_9, %c0_10] : memref<1x240xf32, #tpu.memory_space<vmem>>, vector<1x240xf32>
    %10 = vector.broadcast %9 : vector<1x240xf32> to vector<24x240xf32>
    %11 = arith.addf %8, %10 : vector<24x240xf32>
    %12 = vector.extract_strided_slice %11 {offsets = [0, 0], sizes = [24, 40], strides = [1, 1]} : vector<24x240xf32> to vector<24x40xf32>
    %13 = vector.shape_cast %12 : vector<24x40xf32> to vector<3x8x40xf32>
    %14 = arith.truncf %13 : vector<3x8x40xf32> to vector<3x8x40xbf16>
    %15 = vector.extract_strided_slice %11 {offsets = [0, 80], sizes = [24, 40], strides = [1, 1]} : vector<24x240xf32> to vector<24x40xf32>
    %16 = vector.shape_cast %15 : vector<24x40xf32> to vector<3x8x40xf32>
    %17 = arith.truncf %16 : vector<3x8x40xf32> to vector<3x8x40xbf16>
    %18 = vector.extract_strided_slice %11 {offsets = [0, 160], sizes = [24, 40], strides = [1, 1]} : vector<24x240xf32> to vector<24x40xf32>
    %19 = vector.shape_cast %18 : vector<24x40xf32> to vector<3x8x40xf32>
    %20 = arith.truncf %19 : vector<3x8x40xf32> to vector<3x8x40xbf16>
    "tpu.trace_start"() <{level = 10 : i32, message = "bqd,bkd->bqk"}> : () -> ()
    %cst_11 = arith.constant dense<0.000000e+00> : vector<3x8x8xf32>
    %21 = tpu.matmul %14, %17, %cst_11 {dimension_numbers = #tpu.dot_dimension_numbers<[2], [2], [1], [1], [0, 0, 0, 1, 1, 1], [0], [0]>} : vector<3x8x40xbf16>, vector<3x8x40xbf16>, vector<3x8x8xf32> -> vector<3x8x8xf32>
    "tpu.trace_stop"() : () -> ()
    %cst_12 = arith.constant 0.158113882 : f32
    %22 = vector.broadcast %cst_12 : f32 to vector<3x8x8xf32>
    %23 = arith.mulf %21, %22 : vector<3x8x8xf32>
    %cst_13 = arith.constant dense<0xFF800000> : vector<3x8xf32>
    %24 = vector.multi_reduction <maximumf>, %23, %cst_13 [2] : vector<3x8x8xf32> to vector<3x8xf32>
    %25 = vector.shape_cast %24 : vector<3x8xf32> to vector<3x8x1xf32>
    %26 = vector.broadcast %25 : vector<3x8x1xf32> to vector<3x8x8xf32>
    %27 = arith.subf %23, %26 : vector<3x8x8xf32>
    %28 = math.exp %27 : vector<3x8x8xf32>
    %cst_14 = arith.constant dense<0.000000e+00> : vector<3x8xf32>
    %29 = vector.multi_reduction <add>, %28, %cst_14 [2] : vector<3x8x8xf32> to vector<3x8xf32>
    %30 = vector.shape_cast %29 : vector<3x8xf32> to vector<3x8x1xf32>
    %31 = tpu.reciprocal %30 {approx = true} : vector<3x8x1xf32> -> vector<3x8x1xf32>
    %32 = vector.broadcast %31 : vector<3x8x1xf32> to vector<3x8x8xf32>
    %33 = arith.mulf %28, %32 : vector<3x8x8xf32>
    %34 = arith.truncf %33 : vector<3x8x8xf32> to vector<3x8x8xbf16>
    "tpu.trace_start"() <{level = 10 : i32, message = "bqk,bkd->bqd"}> : () -> ()
    %cst_15 = arith.constant dense<0.000000e+00> : vector<3x8x40xf32>
    %35 = tpu.matmul %34, %20, %cst_15 {dimension_numbers = #tpu.dot_dimension_numbers<[2], [1], [1], [2], [0, 0, 0, 1, 1, 2], [0], [0]>} : vector<3x8x8xbf16>, vector<3x8x40xbf16>, vector<3x8x40xf32> -> vector<3x8x40xf32>
    "tpu.trace_stop"() : () -> ()
    %36 = vector.shape_cast %35 : vector<3x8x40xf32> to vector<24x40xf32>
    %37 = vector.extract_strided_slice %11 {offsets = [0, 40], sizes = [24, 40], strides = [1, 1]} : vector<24x240xf32> to vector<24x40xf32>
    %38 = vector.shape_cast %37 : vector<24x40xf32> to vector<3x8x40xf32>
    %39 = arith.truncf %38 : vector<3x8x40xf32> to vector<3x8x40xbf16>
    %40 = vector.extract_strided_slice %11 {offsets = [0, 120], sizes = [24, 40], strides = [1, 1]} : vector<24x240xf32> to vector<24x40xf32>
    %41 = vector.shape_cast %40 : vector<24x40xf32> to vector<3x8x40xf32>
    %42 = arith.truncf %41 : vector<3x8x40xf32> to vector<3x8x40xbf16>
    %43 = vector.extract_strided_slice %11 {offsets = [0, 200], sizes = [24, 40], strides = [1, 1]} : vector<24x240xf32> to vector<24x40xf32>
    %44 = vector.shape_cast %43 : vector<24x40xf32> to vector<3x8x40xf32>
    %45 = arith.truncf %44 : vector<3x8x40xf32> to vector<3x8x40xbf16>
    "tpu.trace_start"() <{level = 10 : i32, message = "bqd,bkd->bqk"}> : () -> ()
    %cst_16 = arith.constant dense<0.000000e+00> : vector<3x8x8xf32>
    %46 = tpu.matmul %39, %42, %cst_16 {dimension_numbers = #tpu.dot_dimension_numbers<[2], [2], [1], [1], [0, 0, 0, 1, 1, 1], [0], [0]>} : vector<3x8x40xbf16>, vector<3x8x40xbf16>, vector<3x8x8xf32> -> vector<3x8x8xf32>
    "tpu.trace_stop"() : () -> ()
    %cst_17 = arith.constant 0.158113882 : f32
    %47 = vector.broadcast %cst_17 : f32 to vector<3x8x8xf32>
    %48 = arith.mulf %46, %47 : vector<3x8x8xf32>
    %cst_18 = arith.constant dense<0xFF800000> : vector<3x8xf32>
    %49 = vector.multi_reduction <maximumf>, %48, %cst_18 [2] : vector<3x8x8xf32> to vector<3x8xf32>
    %50 = vector.shape_cast %49 : vector<3x8xf32> to vector<3x8x1xf32>
    %51 = vector.broadcast %50 : vector<3x8x1xf32> to vector<3x8x8xf32>
    %52 = arith.subf %48, %51 : vector<3x8x8xf32>
    %53 = math.exp %52 : vector<3x8x8xf32>
    %cst_19 = arith.constant dense<0.000000e+00> : vector<3x8xf32>
    %54 = vector.multi_reduction <add>, %53, %cst_19 [2] : vector<3x8x8xf32> to vector<3x8xf32>
    %55 = vector.shape_cast %54 : vector<3x8xf32> to vector<3x8x1xf32>
    %56 = tpu.reciprocal %55 {approx = true} : vector<3x8x1xf32> -> vector<3x8x1xf32>
    %57 = vector.broadcast %56 : vector<3x8x1xf32> to vector<3x8x8xf32>
    %58 = arith.mulf %53, %57 : vector<3x8x8xf32>
    %59 = arith.truncf %58 : vector<3x8x8xf32> to vector<3x8x8xbf16>
    "tpu.trace_start"() <{level = 10 : i32, message = "bqk,bkd->bqd"}> : () -> ()
    %cst_20 = arith.constant dense<0.000000e+00> : vector<3x8x40xf32>
    %60 = tpu.matmul %59, %45, %cst_20 {dimension_numbers = #tpu.dot_dimension_numbers<[2], [1], [1], [2], [0, 0, 0, 1, 1, 2], [0], [0]>} : vector<3x8x8xbf16>, vector<3x8x40xbf16>, vector<3x8x40xf32> -> vector<3x8x40xf32>
    "tpu.trace_stop"() : () -> ()
    %61 = vector.shape_cast %60 : vector<3x8x40xf32> to vector<24x40xf32>
    %62 = tpu.concatenate %36, %61 in 1 : vector<24x40xf32>, vector<24x40xf32> -> vector<24x80xf32>
    %63 = arith.truncf %62 : vector<24x80xf32> to vector<24x80xbf16>
    %c0_21 = arith.constant 0 : index
    %c0_22 = arith.constant 0 : index
    %64 = vector.load %arg5[%c0_21, %c0_22] : memref<80x80xbf16, #tpu.memory_space<vmem>>, vector<80x80xbf16>
    %cst_23 = arith.constant dense<0.000000e+00> : vector<24x80xf32>
    %65 = tpu.matmul %63, %64, %cst_23 {dimension_numbers = #tpu.dot_dimension_numbers<[1], [0], [0], [1], [0, 0, 1, 1], [], []>} : vector<24x80xbf16>, vector<80x80xbf16>, vector<24x80xf32> -> vector<24x80xf32>
    %66 = vector.extract_strided_slice %0 {offsets = [4, 0], sizes = [1, 80], strides = [1, 1]} : vector<7x80xf32> to vector<1x80xf32>
    %67 = vector.broadcast %66 : vector<1x80xf32> to vector<24x80xf32>
    %68 = arith.addf %65, %67 : vector<24x80xf32>
    %69 = arith.addf %5, %68 : vector<24x80xf32>
    %70 = vector.extract_strided_slice %0 {offsets = [0, 0], sizes = [1, 80], strides = [1, 1]} : vector<7x80xf32> to vector<1x80xf32>
    %71 = vector.extract_strided_slice %0 {offsets = [1, 0], sizes = [1, 80], strides = [1, 1]} : vector<7x80xf32> to vector<1x80xf32>
    %cst_24 = arith.constant dense<0.000000e+00> : vector<24xf32>
    %72 = vector.multi_reduction <add>, %69, %cst_24 [1] : vector<24x80xf32> to vector<24xf32>
    %73 = vector.shape_cast %72 : vector<24xf32> to vector<24x1xf32>
    %cst_25 = arith.constant 8.000000e+01 : f32
    %74 = vector.broadcast %cst_25 : f32 to vector<24x1xf32>
    %75 = arith.divf %73, %74 : vector<24x1xf32>
    %76 = vector.broadcast %75 : vector<24x1xf32> to vector<24x80xf32>
    %77 = arith.subf %69, %76 : vector<24x80xf32>
    %78 = arith.mulf %77, %77 : vector<24x80xf32>
    %cst_26 = arith.constant dense<0.000000e+00> : vector<24xf32>
    %79 = vector.multi_reduction <add>, %78, %cst_26 [1] : vector<24x80xf32> to vector<24xf32>
    %80 = vector.shape_cast %79 : vector<24xf32> to vector<24x1xf32>
    %cst_27 = arith.constant 8.000000e+01 : f32
    %81 = vector.broadcast %cst_27 : f32 to vector<24x1xf32>
    %82 = arith.divf %80, %81 : vector<24x1xf32>
    %83 = vector.broadcast %75 : vector<24x1xf32> to vector<24x80xf32>
    %84 = arith.subf %69, %83 : vector<24x80xf32>
    %cst_28 = arith.constant 9.99999974E-6 : f32
    %85 = vector.broadcast %cst_28 : f32 to vector<24x1xf32>
    %86 = arith.addf %82, %85 : vector<24x1xf32>
    %87 = math.rsqrt %86 : vector<24x1xf32>
    %88 = vector.broadcast %87 : vector<24x1xf32> to vector<24x80xf32>
    %89 = arith.mulf %84, %88 : vector<24x80xf32>
    %90 = vector.broadcast %70 : vector<1x80xf32> to vector<24x80xf32>
    %91 = arith.mulf %89, %90 : vector<24x80xf32>
    %92 = vector.broadcast %71 : vector<1x80xf32> to vector<24x80xf32>
    %93 = arith.addf %91, %92 : vector<24x80xf32>
    %94 = arith.truncf %93 : vector<24x80xf32> to vector<24x80xbf16>
    %c0_29 = arith.constant 0 : index
    %c0_30 = arith.constant 0 : index
    %95 = vector.load %arg6[%c0_29, %c0_30] : memref<80x256xbf16, #tpu.memory_space<vmem>>, vector<80x256xbf16>
    %cst_31 = arith.constant dense<0.000000e+00> : vector<24x256xf32>
    %96 = tpu.matmul %94, %95, %cst_31 {dimension_numbers = #tpu.dot_dimension_numbers<[1], [0], [0], [1], [0, 0, 1, 1], [], []>} : vector<24x80xbf16>, vector<80x256xbf16>, vector<24x256xf32> -> vector<24x256xf32>
    %c0_32 = arith.constant 0 : index
    %c0_33 = arith.constant 0 : index
    %97 = vector.load %arg7[%c0_32, %c0_33] : memref<1x256xf32, #tpu.memory_space<vmem>>, vector<1x256xf32>
    %98 = vector.broadcast %97 : vector<1x256xf32> to vector<24x256xf32>
    %99 = arith.addf %96, %98 : vector<24x256xf32>
    %cst_34 = arith.constant 0.000000e+00 : f32
    %100 = vector.broadcast %cst_34 : f32 to vector<24x256xf32>
    %101 = arith.maximumf %99, %100 : vector<24x256xf32>
    %102 = arith.truncf %101 : vector<24x256xf32> to vector<24x256xbf16>
    %c0_35 = arith.constant 0 : index
    %c0_36 = arith.constant 0 : index
    %103 = vector.load %arg8[%c0_35, %c0_36] : memref<256x80xbf16, #tpu.memory_space<vmem>>, vector<256x80xbf16>
    %cst_37 = arith.constant dense<0.000000e+00> : vector<24x80xf32>
    %104 = tpu.matmul %102, %103, %cst_37 {dimension_numbers = #tpu.dot_dimension_numbers<[1], [0], [0], [1], [0, 0, 1, 1], [], []>} : vector<24x256xbf16>, vector<256x80xbf16>, vector<24x80xf32> -> vector<24x80xf32>
    %105 = vector.extract_strided_slice %0 {offsets = [5, 0], sizes = [1, 80], strides = [1, 1]} : vector<7x80xf32> to vector<1x80xf32>
    %106 = vector.broadcast %105 : vector<1x80xf32> to vector<24x80xf32>
    %107 = arith.addf %104, %106 : vector<24x80xf32>
    %108 = arith.addf %93, %107 : vector<24x80xf32>
    %109 = vector.extract_strided_slice %0 {offsets = [2, 0], sizes = [1, 80], strides = [1, 1]} : vector<7x80xf32> to vector<1x80xf32>
    %110 = vector.extract_strided_slice %0 {offsets = [3, 0], sizes = [1, 80], strides = [1, 1]} : vector<7x80xf32> to vector<1x80xf32>
    %cst_38 = arith.constant dense<0.000000e+00> : vector<24xf32>
    %111 = vector.multi_reduction <add>, %108, %cst_38 [1] : vector<24x80xf32> to vector<24xf32>
    %112 = vector.shape_cast %111 : vector<24xf32> to vector<24x1xf32>
    %cst_39 = arith.constant 8.000000e+01 : f32
    %113 = vector.broadcast %cst_39 : f32 to vector<24x1xf32>
    %114 = arith.divf %112, %113 : vector<24x1xf32>
    %115 = vector.broadcast %114 : vector<24x1xf32> to vector<24x80xf32>
    %116 = arith.subf %108, %115 : vector<24x80xf32>
    %117 = arith.mulf %116, %116 : vector<24x80xf32>
    %cst_40 = arith.constant dense<0.000000e+00> : vector<24xf32>
    %118 = vector.multi_reduction <add>, %117, %cst_40 [1] : vector<24x80xf32> to vector<24xf32>
    %119 = vector.shape_cast %118 : vector<24xf32> to vector<24x1xf32>
    %cst_41 = arith.constant 8.000000e+01 : f32
    %120 = vector.broadcast %cst_41 : f32 to vector<24x1xf32>
    %121 = arith.divf %119, %120 : vector<24x1xf32>
    %122 = vector.broadcast %114 : vector<24x1xf32> to vector<24x80xf32>
    %123 = arith.subf %108, %122 : vector<24x80xf32>
    %cst_42 = arith.constant 9.99999974E-6 : f32
    %124 = vector.broadcast %cst_42 : f32 to vector<24x1xf32>
    %125 = arith.addf %121, %124 : vector<24x1xf32>
    %126 = math.rsqrt %125 : vector<24x1xf32>
    %127 = vector.broadcast %126 : vector<24x1xf32> to vector<24x80xf32>
    %128 = arith.mulf %123, %127 : vector<24x80xf32>
    %129 = vector.broadcast %109 : vector<1x80xf32> to vector<24x80xf32>
    %130 = arith.mulf %128, %129 : vector<24x80xf32>
    %131 = vector.broadcast %110 : vector<1x80xf32> to vector<24x80xf32>
    %132 = arith.addf %130, %131 : vector<24x80xf32>
    %133 = vector.shape_cast %132 : vector<24x80xf32> to vector<3x8x80xf32>
    %cst_43 = arith.constant dense<0.000000e+00> : vector<3x80xf32>
    %134 = vector.multi_reduction <add>, %133, %cst_43 [1] : vector<3x8x80xf32> to vector<3x80xf32>
    %cst_44 = arith.constant 8.000000e+00 : f32
    %135 = vector.broadcast %cst_44 : f32 to vector<3x80xf32>
    %136 = arith.divf %134, %135 : vector<3x80xf32>
    %137 = arith.truncf %136 : vector<3x80xf32> to vector<3x80xbf16>
    %c0_45 = arith.constant 0 : index
    %c0_46 = arith.constant 0 : index
    %138 = vector.load %arg9[%c0_45, %c0_46] : memref<80x80xbf16, #tpu.memory_space<vmem>>, vector<80x80xbf16>
    %cst_47 = arith.constant dense<0.000000e+00> : vector<3x80xf32>
    %139 = tpu.matmul %137, %138, %cst_47 {dimension_numbers = #tpu.dot_dimension_numbers<[1], [0], [0], [1], [0, 0, 1, 1], [], []>} : vector<3x80xbf16>, vector<80x80xbf16>, vector<3x80xf32> -> vector<3x80xf32>
    %140 = vector.extract_strided_slice %0 {offsets = [6, 0], sizes = [1, 80], strides = [1, 1]} : vector<7x80xf32> to vector<1x80xf32>
    %141 = vector.broadcast %140 : vector<1x80xf32> to vector<3x80xf32>
    %142 = arith.addf %139, %141 : vector<3x80xf32>
    %cst_48 = arith.constant 0.000000e+00 : f32
    %143 = vector.broadcast %cst_48 : f32 to vector<3x80xf32>
    %144 = arith.maximumf %142, %143 : vector<3x80xf32>
    %c0_49 = arith.constant 0 : index
    %c0_50 = arith.constant 0 : index
    %145 = vector.load %arg10[%c0_49, %c0_50] : memref<80x1xf32, #tpu.memory_space<vmem>>, vector<80x1xf32>
    %cst_51 = arith.constant dense<0.000000e+00> : vector<3x1xf32>
    %146 = tpu.matmul %144, %145, %cst_51 {dimension_numbers = #tpu.dot_dimension_numbers<[1], [0], [0], [1], [0, 0, 1, 1], [], []>} : vector<3x80xf32>, vector<80x1xf32>, vector<3x1xf32> -> vector<3x1xf32>
    %c0_52 = arith.constant 0 : index
    %c0_53 = arith.constant 0 : index
    %147 = vector.load %arg11[%c0_52, %c0_53] : memref<1x1xf32, #tpu.memory_space<vmem>>, vector<1x1xf32>
    %148 = vector.broadcast %147 : vector<1x1xf32> to vector<3x1xf32>
    %149 = arith.addf %146, %148 : vector<3x1xf32>
    %150 = arith.negf %149 : vector<3x1xf32>
    %151 = math.exp %150 : vector<3x1xf32>
    %cst_54 = arith.constant 1.000000e+00 : f32
    %152 = vector.broadcast %cst_54 : f32 to vector<3x1xf32>
    %153 = arith.addf %152, %151 : vector<3x1xf32>
    %154 = arith.divf %152, %153 : vector<3x1xf32>
    %cst_55 = arith.constant 0.000000e+00 : f32
    %155 = vector.broadcast %cst_55 : f32 to vector<3x47xf32>
    %156 = tpu.concatenate %136, %154, %155 in 1 : vector<3x80xf32>, vector<3x1xf32>, vector<3x47xf32> -> vector<3x128xf32>
    %c0_56 = arith.constant 0 : index
    %c0_57 = arith.constant 0 : index
    %c0_58 = arith.constant 0 : index
    %157 = vector.load %arg13[%c0_56, %c0_57, %c0_58] : memref<1x3x128xf32, #tpu.memory_space<vmem>>, vector<1x3x128xf32>
    %158 = vector.shape_cast %157 : vector<1x3x128xf32> to vector<3x128xf32>
    %159 = vector.shape_cast %156 : vector<3x128xf32> to vector<1x3x128xf32>
    tpu.vector_store %arg13[%c0_56, %c0_57, %c0_58], %159 {strides = array<i32>} : memref<1x3x128xf32, #tpu.memory_space<vmem>>, vector<1x3x128xf32>,
    return
  }
  func.func @transform_0(%arg0: i32) -> (i32, i32, i32) {
    %c0_i32 = arith.constant 0 : i32
    %c0_i32_0 = arith.constant 0 : i32
    %c0_i32_1 = arith.constant 0 : i32
    return %arg0, %c0_i32, %c0_i32_0 : i32, i32, i32
  }
  func.func @transform_1(%arg0: i32) -> (i32, i32, i32) {
    %c0_i32 = arith.constant 0 : i32
    %c0_i32_0 = arith.constant 0 : i32
    %c0_i32_1 = arith.constant 0 : i32
    return %arg0, %c0_i32, %c0_i32_0 : i32, i32, i32
  }
  func.func @transform_2(%arg0: i32) -> (i32, i32) {
    %c0_i32 = arith.constant 0 : i32
    %c0_i32_0 = arith.constant 0 : i32
    %c0_i32_1 = arith.constant 0 : i32
    return %c0_i32, %c0_i32_0 : i32, i32
  }
  func.func @transform_3(%arg0: i32) -> (i32, i32) {
    %c0_i32 = arith.constant 0 : i32
    %c0_i32_0 = arith.constant 0 : i32
    %c0_i32_1 = arith.constant 0 : i32
    return %c0_i32, %c0_i32_0 : i32, i32
  }
  func.func @transform_4(%arg0: i32) -> (i32, i32) {
    %c0_i32 = arith.constant 0 : i32
    %c0_i32_0 = arith.constant 0 : i32
    %c0_i32_1 = arith.constant 0 : i32
    return %c0_i32, %c0_i32_0 : i32, i32
  }
  func.func @transform_5(%arg0: i32) -> (i32, i32) {
    %c0_i32 = arith.constant 0 : i32
    %c0_i32_0 = arith.constant 0 : i32
    %c0_i32_1 = arith.constant 0 : i32
    return %c0_i32, %c0_i32_0 : i32, i32
  }
  func.func @transform_6(%arg0: i32) -> (i32, i32) {
    %c0_i32 = arith.constant 0 : i32
    %c0_i32_0 = arith.constant 0 : i32
    %c0_i32_1 = arith.constant 0 : i32
    return %c0_i32, %c0_i32_0 : i32, i32
  }
  func.func @transform_7(%arg0: i32) -> (i32, i32) {
    %c0_i32 = arith.constant 0 : i32
    %c0_i32_0 = arith.constant 0 : i32
    %c0_i32_1 = arith.constant 0 : i32
    return %c0_i32, %c0_i32_0 : i32, i32
  }
  func.func @transform_8(%arg0: i32) -> (i32, i32) {
    %c0_i32 = arith.constant 0 : i32
    %c0_i32_0 = arith.constant 0 : i32
    %c0_i32_1 = arith.constant 0 : i32
    return %c0_i32, %c0_i32_0 : i32, i32
  }
  func.func @transform_9(%arg0: i32) -> (i32, i32) {
    %c0_i32 = arith.constant 0 : i32
    %c0_i32_0 = arith.constant 0 : i32
    %c0_i32_1 = arith.constant 0 : i32
    return %c0_i32, %c0_i32_0 : i32, i32
  }
  func.func @transform_10(%arg0: i32) -> (i32, i32) {
    %c0_i32 = arith.constant 0 : i32
    %c0_i32_0 = arith.constant 0 : i32
    %c0_i32_1 = arith.constant 0 : i32
    return %c0_i32, %c0_i32_0 : i32, i32
  }
  func.func @transform_11(%arg0: i32) -> (i32, i32) {
    %c0_i32 = arith.constant 0 : i32
    %c0_i32_0 = arith.constant 0 : i32
    %c0_i32_1 = arith.constant 0 : i32
    return %c0_i32, %c0_i32_0 : i32, i32
  }
  func.func @transform_12(%arg0: i32) -> (i32, i32, i32) {
    %c0_i32 = arith.constant 0 : i32
    %c0_i32_0 = arith.constant 0 : i32
    %c0_i32_1 = arith.constant 0 : i32
    return %arg0, %c0_i32, %c0_i32_0 : i32, i32, i32
  }
}

</mosaic_0001>

<bundles_post_ra>
// kernel: expression_encoder.1
= control target key start
LH: loop header
LB: loop body
LE: loop exit
PB: predicated region body
PF: predicated region fallthrough
CT: control target
= control target key end

     0   :  { %s3143_s0 = inlined_call_operand.vmem [shape: f32[6,8,80], index: 0, kind: input, shape index: {}]   ;;  %s3144_s1 = inlined_call_operand.vmem [shape: f32[6,1,80], index: 1, kind: input, shape index: {}]   ;;  %s3145_s2 = inlined_call_operand.vmem [shape: bf16[80,240], index: 2, kind: input, shape index: {}]   ;;  %s3146_s3 = inlined_call_operand.vmem [shape: f32[1,240], index: 3, kind: input, shape index: {}]   ;;  %s3147_s4 = inlined_call_operand.vmem [shape: bf16[80,80], index: 4, kind: input, shape index: {}]   ;;  %s3148_s5 = inlined_call_operand.vmem [shape: bf16[80,256], index: 5, kind: input, shape index: {}]   ;;  %s3149_s6 = inlined_call_operand.hbm [shape: f32[1,256], index: 6, kind: input, shape index: {}]   ;;  %s3150_s7 = inlined_call_operand.vmem [shape: bf16[256,80], index: 7, kind: input, shape index: {}]   ;;  %s3151_s8 = inlined_call_operand.vmem [shape: bf16[80,80], index: 8, kind: input, shape index: {}]   ;;  %s3152_s9 = inlined_call_operand.vmem [shape: f32[80,1], index: 9, kind: input, shape index: {}]   ;;  %s3153_s10 = inlined_call_operand.<no memory space> [shape: f32[1,1], index: 10, kind: input, shape index: {}]   ;;  %s3154_s11 = inlined_call_operand.vmem [shape: f32[7,80], index: 11, kind: input, shape index: {}]   ;;  %s3155_s12 = inlined_call_operand.vmem [shape: f32[2,3,128], index: 12, kind: output, shape index: {}]  }
   0x1   :  { %v17_v0 = vstv %s3153_s10 }
   0x2   :  { %18 = vst [vmem:[#allocation2] sm:$0x1] %v17_v0 }
   0x3   :  { %19 = vsyncpa [#allocation4], 0  ;;  %s2682_s23 = smov 0  }
   0x4 LB: > { %s2688_s24 = sadd.s32 4294967295, %s2601_s23   ;;  %p2156_p0 = scmp.ge.s32.totalorder %s2601_s23, 1  ;;  %s2601_s23 = sphi %s2682_s23, %s25_s23  }
   0x5   : > { %p318_p1 = scmp.lt.s32.totalorder %s2601_s23, 3  ;;  %p2443_p3 = scmp.eq.s32.totalorder %s2688_s24, 0 }
   0x6   : > { %s2603_s25 = smov [#allocation3]  }
   0x7   : > { %p2692_p2 = pnand %p2156_p0, %p318_p1  ;;  %s343_s26 = sshll.u32 %s2603_s25, 4  ;;  %s344_s26 = int_to_ptr.vmem [resolvable:$true] %s343_s26 }
   0x8   : > { %s2576_s27 = scalar_lea.vmem %s344_s26, 32  ;;  %p2584_p10 = scmp.lt.s32.totalorder %s344_s26, %s344_s26 }
   0x9   : > { %p2439_p4 = pneg %p2692_p2  ;;  %p2577_p7 = scmp.ne.s32.totalorder %s344_s26, %s2576_s27 }
   0xa   : > { %p2585_p11 = scmp.lt.s32.totalorder %s2576_s27, %s2576_s27 }
   0xb   : > { %p2440_p5 = pnand %p2443_p3, %p2439_p4 }
   0xc   : > { %p2586_p12 = por %p2585_p11, %p2584_p10 }
   0xd   : > { %p2567_p6 = pneg %p2440_p5 }
   0xf   : > { %p2579_p8 = pnand %p2577_p7, %p2567_p6 }
  0x11   : > { %p2580_p9 = pneg %p2579_p8 }
  0x13   : > { %p2587_p13 = pnand %p2586_p12, %p2580_p9 }
  0x15   : > { %2590 = shalt.err (!%p2587_p13)
}
  0x16   : > { %2442 = dma.hbm_to_vmem [thread:$0]  (!%p2440_p5), %s3149_s6, 32, %s344_s26, [#allocation4]  }
  0x17   : > { %388 = sbr.rel (%p2692_p2) target bundleno = 3568 (0xdf0), region = 68 }
  0x1c   : > { %2596 = dma.done.wait (%p2443_p3), [#allocation4], 32  }
  0x1d   : > { %2598 = vsyncadd (%p2443_p3), [#allocation4], 4294967264  ;;  %s433_s30 = smul.u32 3, %s2688_s24  ;;  %v2604_v1 = vmov 0   ;;  %v2469_v2 = vld [vmem:[%s3145_s2 + $0x44] ss:$8 sps:$4 sm:$0xff]   ;;  %v491_v23 = vlaneseq }
  0x1e   : > { %590 = vmatprep.mubr.bf16.mxu0 %v2604_v1  ;;  %v2471_v3 = vld [vmem:[%s3145_s2 + $0x40] ss:$8 sps:$4 sm:$0xff]   ;;  %564 = vmatprep.subr.bf16.mxu0 %v2469_v2  ;;  %v2472_v4 = vld [vmem:[%s3145_s2 + $0x34] ss:$8 sps:$4 sm:$0xff]   ;;  %v2474_v5 = vld [vmem:[%s3145_s2 + $0x30] ss:$8 sps:$4 sm:$0xff]  }
  0x1f   : > { %p434_p0 = scmp.lt.s32.totalorder %s433_s30, 5  ;;  %565 = vmatpush1.bf16.msra.mxu0 %v2471_v3  ;;  %v2475_v6 = vld [vmem:[%s3145_s2 + $0x24] ss:$8 sps:$4 sm:$0xff]   ;;  %v2477_v7 = vld [vmem:[%s3145_s2 + $0x20] ss:$8 sps:$4 sm:$0xff]   ;;  %vm551_vm0 = vcmask 654336  }
  0x20   : > { %566 = vmatprep.subr.bf16.mxu0 %v2472_v4  ;;  %v2478_v8 = vld [vmem:[%s3145_s2 + $0x14] ss:$8 sps:$4 sm:$0xff]   ;;  %v2480_v9 = vld [vmem:[%s3145_s2 + $0x10] ss:$8 sps:$4 sm:$0xff]   ;;  %v2481_v14 = vld [vmem:[%s3145_s2 + $0x4] ss:$8 sps:$4 sm:$0xff]  }
  0x21   : > { %s3158_s30 = smov (!%p434_p0, %s433_s30), 5  ;;  %v2483_v15 = vld [vmem:[%s3145_s2] ss:$8 sps:$4 sm:$0xff]   ;;  %v2761_v24 = vshrl.u32 %v491_v23, 7  ;;  %v2605_v25 = vmov 0.0   ;;  %vm2606_vm1 = vmmov 0  }
  0x22   : > { %s2161_s21 = sshll.u32 %s3158_s30, 3  ;;  %s442_s13 = scalar_lea.vmem %s3144_s1, %s3158_s30  ;;  %2312 = vmatprep.subr.bf16.mxu1 %v2605_v25  ;;  %v489_v27 = vld [vmem:[%s3146_s3] sm:$0x3]  ;;  %2314 = vmatprep.mubr.msk.bf16.mxu1 %vm2606_vm1, %v2605_v25  ;;  %vm618_vm2 = vcmask 326656   ;;  %vm766_vm3 = vcmask 64512   ;;  %vm809_vm4 = vcmask 1043456  }
  0x23   : > { %s437_s27 = scalar_lea.vmem %s3143_s0, %s2161_s21  ;;  %567 = vmatpush1.bf16.msra.mxu0 %v2474_v5  ;;  %v2163_v12 = vld [vmem:[%s442_s13] ss:$0 sm:$0xff]  ;;  %v2164_v13 = vld [vmem:[%s442_s13 + $0x1] ss:$0 sm:$0xff]  ;;  %v2165_v19 = vld [vmem:[%s442_s13 + $0x2] ss:$0 sm:$0xff] }
  0x24   : > { %568 = vmatprep.subr.bf16.mxu0 %v2475_v6  ;;  %v450_v10 = vld [vmem:[%s437_s27] sm:$0xff]  ;;  %v451_v11 = vld [vmem:[%s437_s27 + $0x8] sm:$0xff]  ;;  %v452_v18 = vld [vmem:[%s437_s27 + $0x10] sm:$0xff]  ;;  %v2766_v26 = vsub.s32 0, %v2761_v24  ;;  %s2607_s26 = smov 48   ;;  %v2807_v56 = vsub.s32 1, %v2761_v24 }
  0x25   : > { %v2748_v16 = vadd.f32 %v2163_v12, %v450_v10  ;;  %v2750_v17 = vadd.f32 %v2164_v13, %v451_v11  ;;  %v2755_v21 = vadd.f32 %v2165_v19, %v452_v18  ;;  %s2608_s27 = smov 96   ;;  %s2609_s28 = smov 8   ;;  %vm1891_vm5 = vcmask 1041409  }
  0x26   : > { %v494_v28 = vrot.slane %v489_v27, %v2766_v26  ;;  %v498_v61 = vrot.slane %v489_v27, %v2807_v56  ;;  %s2610_s29 = smov 88   ;;  %s2611_s13 = smov 56   ;;  %vm1893_vm6 = vcmask 1042434   ;;  %vm2077_vm7 = vcmask 662528  }
  0x27   : > { %569 = vmatpush1.bf16.msra.mxu0 %v2477_v7  ;;  %v477_v20 = vpack.c.bf16 %v2750_v17, %v2748_v16  ;;  %v478_v22 = vpack.c.bf16 %v2755_v21, %v2755_v21  ;;  %s2612_s10 = smov 40   ;;  %p444_p1 = scmp.lt.s32.totalorder %s2688_s24, 1 }
  0x28   : > { %570 = vmatprep.subr.bf16.mxu0 %v2478_v8 }
  0x29   : > { %s3160_s24 = smov (!%p444_p1, %s2688_s24), 1 }
  0x2a   : > { %s2162_s25 = sshll.u32 %s3160_s24, 2 }
  0x2b   : > { %571 = vmatpush1.bf16.msra.mxu0 %v2480_v9 }
  0x2c   : > { %572 = vmatprep.subr.bf16.mxu0 %v2481_v14 }
  0x2f   : > { %573 = vmatpush1.bf16.msra.mxu0 %v2483_v15 }
  0x30   : > { %2336 = vmatprep.subr.bf16.mxu0 %v2605_v25 }
  0x32   : > { %2176 = vmatmul.mubr.msk.bf16.vlgmr.msra.gmra.mxu0 %vm551_vm0, %v477_v20 }
  0x33   : > { %600 = vmatprep.mubr.bf16.mxu0 %v2604_v1 }
  0x3a   : > { %2177 = vmatmul.mubr.msk.bf16.gmra.mxu0 %vm551_vm0, %v478_v22 }
  0x3b   : > { %2338 = vmatprep.mubr.msk.bf16.mxu0 %vm2606_vm1, %v2605_v25 }
  0xf2   : > { %v592_v29 = vpop.f32.mrf.mxu0 }
  0xf3   : > { %v593_v30 = vadd.f32 %v592_v29, %v494_v28 }
  0xf4   : > { %v2776_v31 = vpop.f32.mrf.mxu0 }
  0xf5   : > { %v2778_v32 = vpack.c.bf16 %v593_v30, %v593_v30  ;;  %v595_v10 = vadd.f32 %v2776_v31, %v498_v61 }
  0xf6   : > { %v596_v33 = vpop.f32.mrf.mxu0 }
  0xf7   : > { %v597_v34 = vadd.f32 %v596_v33, %v494_v28  ;;  %616 = vrot.lane.b32.xlu0 %v2778_v32, %s2607_s26  ;;  %v2821_v11 = vpack.c.bf16 %v595_v10, %v595_v10 }
  0xf8   : > { %v598_v35 = vpop.f32.mrf.mxu0 }
  0xf9   : > { %v2781_v36 = vpack.c.bf16 %v597_v34, %v597_v34  ;;  %v599_v63 = vadd.f32 %v598_v35, %v498_v61 }
  0xfa   : > { %v602_v37 = vpop.f32.mrf.mxu0 }
  0xfb   : > { %666 = vrot.lane.b32.xlu0 %v2781_v36, %s2607_s26  ;;  %v603_v38 = vadd.f32 %v602_v37, %v494_v28  ;;  %v2811_v4 = vpack.c.bf16 %v599_v63, %v599_v63 }
  0xfc   : > { %v604_v39 = vpop.f32.mrf.mxu0 }
  0xfd   : > { %v2784_v40 = vpack.c.bf16 %v603_v38, %v603_v38  ;;  %v605_v8 = vadd.f32 %v604_v39, %v498_v61 }
  0xfe   : > { %v606_v41 = vpop.f32.mrf.mxu0 }
  0xff   : > { %715 = vrot.lane.b32.xlu1 %v2784_v40, %s2607_s26  ;;  %v2817_v9 = vpack.c.bf16 %v605_v8, %v605_v8 }
 0x100   : > { %v607_v42 = vpop.f32.mrf.mxu0 }
 0x169   : > { %v617_v43 = vpop.permute.xlu0 %616 }
 0x16a   : > { %v623_v44 = vsel %vm618_vm2, %v617_v43, 0 }
 0x16b   : > { %2313 = vmatpush3.bf16.xpose.msra.mxu1 %v623_v44 }
 0x16c   : > { %2318 = vmatprep.subr.bf16.mxu1 %v2605_v25 }
 0x16d   : > { %v667_v45 = vpop.permute.xlu0 %666 }
 0x16e   : > { %v672_v46 = vsel %vm618_vm2, %v667_v45, 0 }
 0x171   : > { %v716_v47 = vpop.permute.xlu1 %715 }
 0x172   : > { %2315 = vmatmul.mubr.msk.bf16.vlgmr.msra.gmra.mxu1 %vm618_vm2, %v2778_v32  ;;  %v721_v48 = vsel %vm618_vm2, %v716_v47, 0 }
 0x173   : > { %2319 = vmatpush3.bf16.xpose.msra.mxu1 %v672_v46  ;;  %2320 = vmatprep.mubr.msk.bf16.mxu1 %vm2606_vm1, %v2605_v25 }
 0x174   : > { %2324 = vmatprep.subr.bf16.mxu1 %v2605_v25 }
 0x17a   : > { %2321 = vmatmul.mubr.msk.bf16.vlgmr.msra.gmra.mxu1 %vm618_vm2, %v2781_v36 }
 0x17b   : > { %2325 = vmatpush3.bf16.xpose.msra.mxu1 %v721_v48  ;;  %2326 = vmatprep.mubr.msk.bf16.mxu1 %vm2606_vm1, %v2605_v25 }
 0x17c   : > { %2330 = vmatprep.subr.bf16.mxu1 %v2605_v25 }
 0x182   : > { %2327 = vmatmul.mubr.msk.bf16.vlgmr.msra.gmra.mxu1 %vm618_vm2, %v2784_v40 }
 0x183   : > { %2332 = vmatprep.mubr.msk.bf16.mxu1 %vm2606_vm1, %v2605_v25 }
 0x232   : > { %v659_v49 = vpop.f32.mrf.mxu1 }
 0x233   : > { %v763_v50 = vmul.f32 0.15811388, %v659_v49 }
 0x234   : > { %v2316_v51 = vpop.f32.mrf.mxu1 }
 0x235   : > { %v767_v52 = vsel %vm766_vm3, %v763_v50, -inf }
 0x236   : > { %768 = vmax.xlane.f32.xlu1 %v767_v52  ;;  %v662_v53 = vpop.f32.mrf.mxu1 }
 0x238   : > { %v2317_v54 = vpop.f32.mrf.mxu1 }
 0x23a   : > { %v708_v55 = vpop.f32.mrf.mxu1 }
 0x23b   : > { %v764_v57 = vmul.f32 0.15811388, %v708_v55 }
 0x23c   : > { %v2322_v58 = vpop.f32.mrf.mxu1 }
 0x23d   : > { %v770_v59 = vsel %vm766_vm3, %v764_v57, -inf }
 0x23e   : > { %771 = vmax.xlane.f32.xlu0 %v770_v59  ;;  %v711_v60 = vpop.f32.mrf.mxu1 }
 0x240   : > { %v2323_v62 = vpop.f32.mrf.mxu1 }
 0x242   : > { %v757_v0 = vpop.f32.mrf.mxu1 }
 0x243   : > { %v765_v2 = vmul.f32 0.15811388, %v757_v0 }
 0x244   : > { %v2328_v3 = vpop.f32.mrf.mxu1 }
 0x245   : > { %v773_v5 = vsel %vm766_vm3, %v765_v2, -inf }
 0x246   : > { %774 = vmax.xlane.f32.xlu0 %v773_v5  ;;  %v760_v6 = vpop.f32.mrf.mxu1 }
 0x247   : > { %854 = vrot.lane.b32.xlu1 %v2811_v4, %s2608_s27 }
 0x248   : > { %v2329_v7 = vpop.f32.mrf.mxu1 }
 0x24b   : > { %953 = vrot.lane.b32.xlu1 %v2778_v32, %s2609_s28 }
 0x24f   : > { %903 = vrot.lane.b32.xlu1 %v2817_v9, %s2608_s27 }
 0x25c   : > { %804 = vrot.lane.b32.xlu0 %v2821_v11, %s2608_s27 }
 0x260   : > { %955 = vrot.lane.b32.xlu0 %v2821_v11, %s2609_s28 }
 0x2bf   : > { %v769_v12 = vpop.xlane.xlu1 %768 }
 0x2c0   : > { %v776_v13 = vsub.f32 %v763_v50, %v769_v12 }
 0x2c2   : > { %v779_v14 = vmul.f32 1.442695, %v776_v13 }
 0x2c3   : > { %v855_v15 = vpop.permute.xlu1 %854 }
 0x2c4   : > { %2525 = vpow2.f32 %v779_v14  ;;  %v860_v18 = vsel %vm809_vm4, %v855_v15, 0 }
 0x2c5   : > { %2337 = vmatpush3.bf16.msra.mxu0 %v860_v18 }
 0x2c6   : > { %2348 = vmatprep.subr.bf16.mxu0 %v2605_v25 }
 0x2c7   : > { %v772_v19 = vpop.xlane.xlu0 %771  ;;  %v954_v39 = vpop.permute.xlu1 %953 }
 0x2c8   : > { %v777_v20 = vsub.f32 %v764_v57, %v772_v19 }
 0x2ca   : > { %v781_v22 = vmul.f32 1.442695, %v777_v20 }
 0x2cb   : > { %v904_v41 = vpop.permute.xlu1 %903 }
 0x2cc   : > { %2527 = vpow2.f32 %v781_v22 }
 0x2cf   : > { %v775_v23 = vpop.xlane.xlu0 %774 }
 0x2d0   : > { %v778_v34 = vsub.f32 %v765_v2, %v775_v23 }
 0x2d1   : > { %v2526_v27 = vpop.eup %2525 }
 0x2d2   : > { %v785_v28 = vsel %vm766_vm3, %v2526_v27, 0.0  ;;  %v783_v35 = vmul.f32 1.442695, %v778_v34 }
 0x2d3   : > { %786 = vadd.xlane.f32.xlu1 %v785_v28  ;;  %v805_v29 = vpop.permute.xlu0 %804 }
 0x2d4   : > { %v811_v30 = vsel %vm809_vm4, %v805_v29, 0  ;;  %2529 = vpow2.f32 %v783_v35 }
 0x2d5   : > { %2331 = vmatpush3.bf16.msra.mxu1 %v811_v30 }
 0x2d6   : > { %2342 = vmatprep.subr.bf16.mxu1 %v2605_v25 }
 0x2d7   : > { %v956_v43 = vpop.permute.xlu0 %955 }
 0x2d8   : > { %v958_v49 = vsel %vm766_vm3, %v954_v39, %v956_v43 }
 0x2d9   : > { %v2528_v31 = vpop.eup %2527  ;;  %v963_v51 = vsel %vm618_vm2, %v958_v49, 0 }
 0x2da   : > { %v788_v33 = vsel %vm766_vm3, %v2528_v31, 0.0 }
 0x2db   : > { %789 = vadd.xlane.f32.xlu0 %v788_v33 }
 0x2e1   : > { %v2530_v37 = vpop.eup %2529 }
 0x2e2   : > { %v791_v38 = vsel %vm766_vm3, %v2530_v37, 0.0 }
 0x2e4   : > { %1009 = vrot.lane.b32.xlu1 %v2811_v4, %s2609_s28 }
 0x2f1   : > { %1007 = vrot.lane.b32.xlu0 %v2781_v36, %s2609_s28 }
 0x2f5   : > { %1060 = vrot.lane.b32.xlu0 %v2784_v40, %s2609_s28 }
 0x2f9   : > { %951 = vrot.lane.b32.xlu0 %v2778_v32, %s2610_s29 }
 0x2fd   : > { %1058 = vrot.lane.b32.xlu0 %v2784_v40, %s2610_s29  ;;  %v909_v40 = vsel %vm809_vm4, %v904_v41, 0 }
 0x308   : > { %792 = vadd.xlane.f32.xlu1 %v791_v38 }
 0x319   : > { %1062 = vrot.lane.b32.xlu1 %v2817_v9, %s2609_s28  ;;  %s447_s28 = scalar_lea.vmem %s3155_s12, %s2162_s25 }
 0x31d   : > { %1005 = vrot.lane.b32.xlu1 %v2781_v36, %s2610_s29 }
 0x35c   : > { %v787_v42 = vpop.xlane.xlu1 %786 }
 0x35d   : > { %2531 = vrcp.f32 %v787_v42 }
 0x360   : > { %v1010_v54 = vpop.permute.xlu1 %1009 }
 0x364   : > { %v790_v44 = vpop.xlane.xlu0 %789 }
 0x365   : > { %2533 = vrcp.f32 %v790_v44 }
 0x368   : > { %v1008_v47 = vpop.permute.xlu0 %1007 }
 0x369   : > { %v1011_v63 = vsel %vm766_vm3, %v1008_v47, %v1010_v54 }
 0x36a   : > { %v2532_v45 = vpop.eup %2531  ;;  %v1016_v2 = vsel %vm618_vm2, %v1011_v63, 0 }
 0x36b   : > { %v797_v32 = vmul.f32 %v2532_v45, %v2526_v27 }
 0x36c   : > { %v1061_v52 = vpop.permute.xlu0 %1060 }
 0x36d   : > { %v800_v46 = vpack.c.bf16 %v797_v32, %v797_v32 }
 0x36f   : > { %2333 = vmatmul.mubr.msk.bf16.vlgmr.msra.gmra.mxu1 %vm766_vm3, %v800_v46 }
 0x370   : > { %2343 = vmatpush3.bf16.msra.mxu1 %v909_v40  ;;  %2344 = vmatprep.mubr.msk.bf16.mxu1 %vm2606_vm1, %v2605_v25  ;;  %v952_v53 = vpop.permute.xlu0 %951 }
 0x371   : > { %2354 = vmatprep.subr.bf16.mxu1 %v2605_v25 }
 0x372   : > { %v2534_v36 = vpop.eup %2533 }
 0x373   : > { %v798_v48 = vmul.f32 %v2534_v36, %v2528_v31 }
 0x374   : > { %v1059_v60 = vpop.permute.xlu0 %1058 }
 0x375   : > { %v801_v50 = vpack.c.bf16 %v798_v48, %v798_v48 }
 0x377   : > { %2339 = vmatmul.mubr.msk.bf16.vlgmr.msra.gmra.mxu0 %vm766_vm3, %v801_v50 }
 0x378   : > { %2349 = vmatpush3.bf16.xpose.msra.mxu0 %v963_v51  ;;  %2350 = vmatprep.mubr.msk.bf16.mxu0 %vm2606_vm1, %v2605_v25 }
 0x379   : > { %2360 = vmatprep.subr.bf16.mxu0 %v2605_v25 }
 0x37f   : > { %2351 = vmatmul.mubr.msk.bf16.vlgmr.msra.gmra.mxu0 %vm618_vm2, %v952_v53 }
 0x380   : > { %2362 = vmatprep.mubr.msk.bf16.mxu0 %vm2606_vm1, %v2605_v25 }
 0x391   : > { %v793_v55 = vpop.xlane.xlu1 %792 }
 0x392   : > { %2535 = vrcp.f32 %v793_v55 }
 0x395   : > { %v1063_v57 = vpop.permute.xlu1 %1062 }
 0x396   : > { %v1064_v58 = vsel %vm766_vm3, %v1061_v52, %v1063_v57 }
 0x397   : > { %v1069_v59 = vsel %vm618_vm2, %v1064_v58, 0 }
 0x398   : > { %2361 = vmatpush3.bf16.xpose.msra.mxu0 %v1069_v59 }
 0x399   : > { %2372 = vmatprep.subr.bf16.mxu0 %v2605_v25  ;;  %v1006_v3 = vpop.permute.xlu1 %1005 }
 0x39f   : > { %v2536_v61 = vpop.eup %2535  ;;  %2363 = vmatmul.mubr.msk.bf16.vlgmr.msra.gmra.mxu0 %vm618_vm2, %v1059_v60 }
 0x3a0   : > { %v799_v62 = vmul.f32 %v2536_v61, %v2530_v37  ;;  %2374 = vmatprep.mubr.msk.bf16.mxu0 %vm2606_vm1, %v2605_v25 }
 0x3a2   : > { %v802_v0 = vpack.c.bf16 %v799_v62, %v799_v62 }
 0x3a4   : > { %2345 = vmatmul.mubr.msk.bf16.vlgmr.msra.gmra.mxu1 %vm766_vm3, %v802_v0 }
 0x3a5   : > { %2355 = vmatpush3.bf16.xpose.msra.mxu1 %v1016_v2  ;;  %2356 = vmatprep.mubr.msk.bf16.mxu1 %vm2606_vm1, %v2605_v25 }
 0x3a6   : > { %2366 = vmatprep.subr.bf16.mxu1 %v2605_v25 }
 0x3ac   : > { %2357 = vmatmul.mubr.msk.bf16.vlgmr.msra.gmra.mxu1 %vm618_vm2, %v1006_v3 }
 0x3ad   : > { %2368 = vmatprep.mubr.msk.bf16.mxu1 %vm2606_vm1, %v2605_v25 }
 0x42f   : > { %v2873_v5 = vpop.f32.mrf.mxu1 }
 0x431   : > { %v2334_v6 = vpop.f32.mrf.mxu1 }
 0x433   : > { %v850_v7 = vpop.f32.mrf.mxu1 }
 0x435   : > { %v2335_v8 = vpop.f32.mrf.mxu1 }
 0x437   : > { %v2875_v10 = vpop.f32.mrf.mxu0 }
 0x439   : > { %v2340_v12 = vpop.f32.mrf.mxu0 }
 0x43b   : > { %v899_v13 = vpop.f32.mrf.mxu0 }
 0x43d   : > { %v2341_v14 = vpop.f32.mrf.mxu0 }
 0x43f   : > { %v999_v15 = vpop.f32.mrf.mxu0 }
 0x440   : > { %v1111_v18 = vmul.f32 0.15811388, %v999_v15 }
 0x441   : > { %v2352_v19 = vpop.f32.mrf.mxu0 }
 0x442   : > { %v1114_v20 = vsel %vm766_vm3, %v1111_v18, -inf  ;;  %v2485_v19 = vld [vmem:[%s3147_s4 + $0x18] sm:$0xff]  }
 0x443   : > { %1115 = vmax.xlane.f32.xlu1 %v1114_v20  ;;  %v1002_v22 = vpop.f32.mrf.mxu0  ;;  %v2486_v20 = vld [vmem:[%s3147_s4 + $0x10] sm:$0xff]  }
 0x445   : > { %v2353_v23 = vpop.f32.mrf.mxu0 }
 0x446   : > { %v2487_v23 = vld [vmem:[%s3147_s4 + $0x8] sm:$0xff]  }
 0x45f   : > { %v1105_v27 = vpop.f32.mrf.mxu0 }
 0x460   : > { %v1113_v41 = vmul.f32 0.15811388, %v1105_v27 }
 0x461   : > { %v2364_v28 = vpop.f32.mrf.mxu0 }
 0x462   : > { %v1120_v45 = vsel %vm766_vm3, %v1113_v41, -inf  ;;  %v2488_v28 = vld [vmem:[%s3147_s4] sm:$0xff]  }
 0x463   : > { %v1108_v29 = vpop.f32.mrf.mxu0 }
 0x464   : > { %v2878_v30 = vpop.f32.mrf.mxu1 }
 0x465   : > { %v2365_v31 = vpop.f32.mrf.mxu0 }
 0x466   : > { %v2346_v33 = vpop.f32.mrf.mxu1 }
 0x468   : > { %v948_v34 = vpop.f32.mrf.mxu1 }
 0x46a   : > { %v2347_v35 = vpop.f32.mrf.mxu1 }
 0x46c   : > { %v1052_v37 = vpop.f32.mrf.mxu1 }
 0x46d   : > { %v1112_v38 = vmul.f32 0.15811388, %v1052_v37 }
 0x46e   : > { %v2358_v39 = vpop.f32.mrf.mxu1 }
 0x46f   : > { %v1117_v42 = vsel %vm766_vm3, %v1112_v38, -inf }
 0x470   : > { %1118 = vmax.xlane.f32.xlu0 %v1117_v42  ;;  %v1055_v43 = vpop.f32.mrf.mxu1 }
 0x472   : > { %v2359_v44 = vpop.f32.mrf.mxu1 }
 0x474   : > { %1121 = vmax.xlane.f32.xlu0 %v1120_v45 }
 0x4cc   : > { %v1116_v32 = vpop.xlane.xlu1 %1115 }
 0x4cd   : > { %v1123_v46 = vsub.f32 %v1111_v18, %v1116_v32  ;;  %v2484_v18 = vld [vmem:[%s3147_s4 + $0x20] sm:$0xff]  }
 0x4cf   : > { %v1126_v40 = vmul.f32 1.442695, %v1123_v46 }
 0x4d1   : > { %2537 = vpow2.f32 %v1126_v40 }
 0x4de   : > { %v2538_v36 = vpop.eup %2537 }
 0x4df   : > { %v1132_v47 = vsel %vm766_vm3, %v2538_v36, 0.0 }
 0x4e0   : > { %1133 = vadd.xlane.f32.xlu1 %v1132_v47 }
 0x4f1   : > { %1198 = vrot.lane.b32.xlu1 %v2811_v4, %s2611_s13 }
 0x4f9   : > { %v1119_v48 = vpop.xlane.xlu0 %1118 }
 0x4fa   : > { %v1124_v49 = vsub.f32 %v1112_v38, %v1119_v48 }
 0x4fc   : > { %v1128_v50 = vmul.f32 1.442695, %v1124_v49 }
 0x4fd   : > { %v1122_v51 = vpop.xlane.xlu0 %1121 }
 0x4fe   : > { %2539 = vpow2.f32 %v1128_v50  ;;  %v1125_v52 = vsub.f32 %v1113_v41, %v1122_v51  ;;  %v1323_v50 = vsub.s32 4, %v2761_v24  ;;  %v2925_v51 = vld [vmem:[%s3154_s11] sm:$0x7f] }
 0x500   : > { %v1130_v53 = vmul.f32 1.442695, %v1125_v52 }
 0x502   : > { %2541 = vpow2.f32 %v1130_v53 }
 0x50b   : > { %v2540_v54 = vpop.eup %2539 }
 0x50c   : > { %v1135_v55 = vsel %vm766_vm3, %v2540_v54, 0.0 }
 0x50d   : > { %1136 = vadd.xlane.f32.xlu0 %v1135_v55 }
 0x50f   : > { %v2542_v57 = vpop.eup %2541 }
 0x510   : > { %v1138_v58 = vsel %vm766_vm3, %v2542_v57, 0.0 }
 0x515   : > { %1139 = vadd.xlane.f32.xlu1 %v1138_v58 }
 0x523   : > { %1150 = vrot.lane.b32.xlu0 %v2821_v11, %s2611_s13 }
 0x526   : > { %1246 = vrot.lane.b32.xlu1 %v2817_v9, %s2611_s13 }
 0x569   : > { %v1134_v4 = vpop.xlane.xlu1 %1133 }
 0x56a   : > { %2543 = vrcp.f32 %v1134_v4 }
 0x56d   : > { %v1199_v59 = vpop.permute.xlu1 %1198 }
 0x56e   : > { %v1204_v60 = vsel %vm809_vm4, %v1199_v59, 0 }
 0x56f   : > { %2373 = vmatpush3.bf16.msra.mxu0 %v1204_v60 }
 0x570   : > { %2384 = vmatprep.subr.bf16.mxu0 %v2484_v18 }
 0x577   : > { %v2544_v61 = vpop.eup %2543 }
 0x578   : > { %v1144_v63 = vmul.f32 %v2544_v61, %v2538_v36 }
 0x57a   : > { %v1147_v3 = vpack.c.bf16 %v1144_v63, %v1144_v63 }
 0x596   : > { %v1137_v62 = vpop.xlane.xlu0 %1136 }
 0x597   : > { %2545 = vrcp.f32 %v1137_v62 }
 0x59a   : > { %v1151_v0 = vpop.permute.xlu0 %1150 }
 0x59b   : > { %v1156_v2 = vsel %vm809_vm4, %v1151_v0, 0 }
 0x59c   : > { %2367 = vmatpush3.bf16.msra.mxu1 %v1156_v2 }
 0x59d   : > { %2378 = vmatprep.subr.bf16.mxu1 %v2605_v25 }
 0x59e   : > { %v1140_v11 = vpop.xlane.xlu1 %1139 }
 0x59f   : > { %2547 = vrcp.f32 %v1140_v11  ;;  %2369 = vmatmul.mubr.msk.bf16.vlgmr.msra.gmra.mxu1 %vm766_vm3, %v1147_v3 }
 0x5a0   : > { %2380 = vmatprep.mubr.msk.bf16.mxu1 %vm2606_vm1, %v2605_v25 }
 0x5a2   : > { %v1247_v9 = vpop.permute.xlu1 %1246 }
 0x5a3   : > { %v1252_v6 = vsel %vm809_vm4, %v1247_v9, 0 }
 0x5a4   : > { %v2546_v7 = vpop.eup %2545  ;;  %2379 = vmatpush3.bf16.msra.mxu1 %v1252_v6 }
 0x5a5   : > { %v1145_v8 = vmul.f32 %v2546_v7, %v2540_v54 }
 0x5a7   : > { %v1148_v12 = vpack.c.bf16 %v1145_v8, %v1145_v8 }
 0x5a9   : > { %2375 = vmatmul.mubr.msk.bf16.vlgmr.msra.gmra.mxu0 %vm766_vm3, %v1148_v12 }
 0x5aa   : > { %2385 = vmatpush3.bf16.msra.mxu0 %v2484_v18  ;;  %v2489_v18 = vld [vmem:[%s3148_s5 + $0x40] ss:$8 sps:$4 sm:$0xff]  }
 0x5ab   : > { %2386 = vmatprep.subr.bf16.mxu0 %v2485_v19 }
 0x5ac   : > { %v2548_v13 = vpop.eup %2547 }
 0x5ad   : > { %v1146_v14 = vmul.f32 %v2548_v13, %v2542_v57 }
 0x5ae   : > { %2387 = vmatpush3.bf16.msra.mxu0 %v2485_v19  ;;  %v2494_v19 = vld [vmem:[%s3148_s5 + $0x34] ss:$8 sps:$4 sm:$0xff]  }
 0x5af   : > { %v1149_v15 = vpack.c.bf16 %v1146_v14, %v1146_v14  ;;  %2388 = vmatprep.subr.bf16.mxu0 %v2486_v20 }
 0x5b1   : > { %2381 = vmatmul.mubr.msk.bf16.vlgmr.msra.gmra.mxu1 %vm766_vm3, %v1149_v15  ;;  %v2491_v15 = vld [vmem:[%s3148_s5 + $0x44] ss:$8 sps:$4 sm:$0xff]  }
 0x5b2   : > { %1578 = vmatprep.mubr.bf16.mxu1 %v2604_v1  ;;  %2389 = vmatpush3.bf16.msra.mxu0 %v2486_v20  ;;  %v2492_v20 = vld [vmem:[%s3148_s5 + $0x30] ss:$8 sps:$4 sm:$0xff]  }
 0x5b3   : > { %2390 = vmatprep.subr.bf16.mxu0 %v2487_v23  ;;  %1552 = vmatprep.subr.bf16.mxu1 %v2491_v15 }
 0x5b4   : > { %1553 = vmatpush1.bf16.msra.mxu1 %v2489_v18 }
 0x5b5   : > { %1554 = vmatprep.subr.bf16.mxu1 %v2494_v19 }
 0x5b6   : > { %2391 = vmatpush3.bf16.msra.mxu0 %v2487_v23  ;;  %v2495_v23 = vld [vmem:[%s3148_s5 + $0x20] ss:$8 sps:$4 sm:$0xff]  }
 0x5b7   : > { %2392 = vmatprep.subr.bf16.mxu0 %v2488_v28 }
 0x5b8   : > { %1555 = vmatpush1.bf16.msra.mxu1 %v2492_v20 }
 0x5ba   : > { %2393 = vmatpush3.bf16.msra.mxu0 %v2488_v28  ;;  %v2498_v28 = vld [vmem:[%s3148_s5 + $0x10] ss:$8 sps:$4 sm:$0xff]  }
 0x65f   : > { %v1192_v22 = vpop.f32.mrf.mxu1 }
 0x661   : > { %v2370_v27 = vpop.f32.mrf.mxu1 }
 0x662   : > { %v2500_v27 = vld [vmem:[%s3148_s5 + $0x14] ss:$8 sps:$4 sm:$0xff]  }
 0x663   : > { %v1195_v29 = vpop.f32.mrf.mxu1 }
 0x664   : > { %v2503_v29 = vld [vmem:[%s3148_s5 + $0x4] ss:$8 sps:$4 sm:$0xff]  }
 0x665   : > { %v2371_v31 = vpop.f32.mrf.mxu1 }
 0x666   : > { %v2501_v31 = vld [vmem:[%s3148_s5] ss:$8 sps:$4 sm:$0xff]  }
 0x669   : > { %v1240_v33 = vpop.f32.mrf.mxu0 }
 0x66a   : > { %v2464_v34 = vpack.i.bf16 %v1240_v33, %v1192_v22  ;;  %v2497_v22 = vld [vmem:[%s3148_s5 + $0x24] ss:$8 sps:$4 sm:$0xff]   ;;  %v2504_v33 = vld [vmem:[%s3150_s7 + $0x78] sm:$0xff]  }
 0x66b   : > { %v2376_v35 = vpop.f32.mrf.mxu0  ;;  %1556 = vmatprep.subr.bf16.mxu1 %v2497_v22  ;;  %2267 = vmatprep.subr.bf16.mxu0 %v2504_v33 }
 0x66c   : > { %2465 = vrot.lane.b32.xlu0 %v2464_v34, %s2612_s10  ;;  %1557 = vmatpush1.bf16.msra.mxu1 %v2495_v23  ;;  %v2505_v34 = vld [vmem:[%s3150_s7 + $0x38] sm:$0xff]   ;;  %v2506_v35 = vld [vmem:[%s3150_s7 + $0x70] sm:$0xff]  }
 0x66d   : > { %v1243_v37 = vpop.f32.mrf.mxu0  ;;  %1558 = vmatprep.subr.bf16.mxu1 %v2500_v27 }
 0x66e   : > { %v2507_v37 = vld [vmem:[%s3150_s7 + $0x30] sm:$0xff]  }
 0x66f   : > { %v2377_v38 = vpop.f32.mrf.mxu0 }
 0x670   : > { %1559 = vmatpush1.bf16.msra.mxu1 %v2498_v28  ;;  %v2508_v38 = vld [vmem:[%s3150_s7 + $0x68] sm:$0xff]  }
 0x671   : > { %v1288_v39 = vpop.f32.mrf.mxu1  ;;  %1560 = vmatprep.subr.bf16.mxu1 %v2503_v29 }
 0x672   : > { %1301 = vrot.lane.b32.xlu1 %v1288_v39, %s2612_s10  ;;  %v2509_v39 = vld [vmem:[%s3150_s7 + $0x28] sm:$0xff]   ;;  %s2613_s10 = smov 80  }
 0x673   : > { %v2382_v41 = vpop.f32.mrf.mxu1 }
 0x674   : > { %1561 = vmatpush1.bf16.msra.mxu1 %v2501_v31  ;;  %v2510_v41 = vld [vmem:[%s3150_s7 + $0x60] sm:$0xff]  }
 0x675   : > { %v1291_v42 = vpop.f32.mrf.mxu1  ;;  %2398 = vmatprep.subr.bf16.mxu1 %v2605_v25 }
 0x676   : > { %v2511_v42 = vld [vmem:[%s3150_s7 + $0x20] sm:$0xff]  }
 0x677   : > { %v2383_v43 = vpop.f32.mrf.mxu1 }
 0x678   : > { %v2512_v43 = vld [vmem:[%s3150_s7 + $0x58] sm:$0xff]  }
 0x6de   : > { %v2466_v44 = vpop.permute.xlu0 %2465 }
 0x6df   : > { %v2468_v45 = vunpack.i.h.bf16 %v2466_v44  ;;  %v2467_v32 = vunpack.i.l.bf16 %v2466_v44  ;;  %v2513_v44 = vld [vmem:[%s3150_s7 + $0x18] sm:$0xff]  }
 0x6e1   : > { %v1307_v46 = vsel %vm618_vm2, %v2875_v10, %v2468_v45  ;;  %v1306_v40 = vsel %vm618_vm2, %v2873_v5, %v2467_v32  ;;  %v1324_v10 = vrot.slane %v2925_v51, %v1323_v50 }
 0x6e2   : > { %v1309_v36 = vpack.c.bf16 %v1307_v46, %v1306_v40 }
 0x6e4   : > { %2394 = vmatprep.mubr.msk.bf16.mxu0 %vm551_vm0, %v1309_v36  ;;  %v1302_v47 = vpop.permute.xlu1 %1301 }
 0x6e5   : > { %v1308_v48 = vsel %vm618_vm2, %v2878_v30, %v1302_v47 }
 0x6e6   : > { %v1310_v49 = vpack.c.bf16 %v1308_v48, %v1308_v48 }
 0x6e8   : > { %2395 = vmatmul.mubr.msk.bf16.vlgmr.msra.gmra.mxu0 %vm551_vm0, %v1310_v49 }
 0x6e9   : > { %2268 = vmatpush3.bf16.msra.mxu0 %v2505_v34 }
 0x6ea   : > { %2269 = vmatprep.subr.bf16.mxu0 %v2506_v35 }
 0x6ed   : > { %2270 = vmatpush3.bf16.msra.mxu0 %v2507_v37 }
 0x6ee   : > { %2271 = vmatprep.subr.bf16.mxu0 %v2508_v38 }
 0x6f1   : > { %2272 = vmatpush3.bf16.msra.mxu0 %v2509_v39 }
 0x6f2   : > { %2273 = vmatprep.subr.bf16.mxu0 %v2510_v41 }
 0x6f5   : > { %2274 = vmatpush3.bf16.msra.mxu0 %v2511_v42  ;;  %v1641_v42 = vsub.s32 5, %v2761_v24 }
 0x6f6   : > { %2275 = vmatprep.subr.bf16.mxu0 %v2512_v43 }
 0x6f9   : > { %2276 = vmatpush3.bf16.msra.mxu0 %v2513_v44  ;;  %v1642_v44 = vrot.slane %v2925_v51, %v1641_v42 }
 0x7a8   : > { %v2396_v5 = vpop.f32.mrf.mxu0 }
 0x7a9   : > { %v1404_v53 = vadd.f32 %v2396_v5, %v1324_v10  ;;  %v1455_v5 = vrot.slane %v2925_v51, %v2766_v26 }
 0x7aa   : > { %v1395_v52 = vpop.f32.mrf.mxu0 }
 0x7ab   : > { %v1396_v54 = vadd.f32 %v1395_v52, %v1324_v10  ;;  %v1411_v59 = vadd.f32 %v1404_v53, %v2755_v21 }
 0x7ac   : > { %v2397_v55 = vpop.f32.mrf.mxu0 }
 0x7ad   : > { %v1409_v57 = vadd.f32 %v1396_v54, %v2748_v16  ;;  %v1418_v62 = vsel %vm551_vm0, %v1411_v59, 0.0  ;;  %v1462_v55 = vrot.slane %v2925_v51, %v2807_v56 }
 0x7ae   : > { %v1398_v30 = vpop.f32.mrf.mxu0 }
 0x7af   : > { %v1399_v58 = vadd.f32 %v1398_v30, %v1324_v10  ;;  %v1412_v4 = vsel %vm551_vm0, %v1409_v57, 0.0 }
 0x7b0   : > { %1413 = vadd.xlane.f32.xlu0 %v1412_v4 }
 0x7b1   : > { %v1410_v60 = vadd.f32 %v1399_v58, %v2750_v17 }
 0x7b3   : > { %v1415_v61 = vsel %vm551_vm0, %v1410_v60, 0.0 }
 0x7b4   : > { %1416 = vadd.xlane.f32.xlu1 %v1415_v61  ;;  %1419 = vadd.xlane.f32.xlu0 %v1418_v62 }
 0x839   : > { %v1414_v63 = vpop.xlane.xlu0 %1413 }
 0x83a   : > { %v1422_v0 = vmul.f32 0.0125, %v1414_v63 }
 0x83c   : > { %v2934_v2 = vsub.f32 %v1409_v57, %v1422_v0 }
 0x83d   : > { %v1417_v16 = vpop.xlane.xlu1 %1416  ;;  %v1420_v3 = vpop.xlane.xlu0 %1419 }
 0x83e   : > { %v1423_v11 = vmul.f32 0.0125, %v1417_v16  ;;  %v1424_v9 = vmul.f32 0.0125, %v1420_v3  ;;  %v1428_v21 = vmul.f32 %v2934_v2, %v2934_v2  ;;  %v2515_v16 = vld [vmem:[%s3150_s7 + $0x10] sm:$0xff]   ;;  %v2517_v3 = vld [vmem:[%s3150_s7 + $0x8] sm:$0xff]  }
 0x840   : > { %v2938_v6 = vsub.f32 %v1410_v60, %v1423_v11  ;;  %v2940_v17 = vsub.f32 %v1411_v59, %v1424_v9  ;;  %v1431_v7 = vsel %vm551_vm0, %v1428_v21, 0.0  ;;  %v2518_v11 = vld [vmem:[%s3150_s7 + $0x40] sm:$0xff]  }
 0x841   : > { %1432 = vadd.xlane.f32.xlu0 %v1431_v7  ;;  %v2519_v9 = vld [vmem:[%s3150_s7] sm:$0xff]  }
 0x842   : > { %v1429_v8 = vmul.f32 %v2938_v6, %v2938_v6  ;;  %v1430_v12 = vmul.f32 %v2940_v17, %v2940_v17  ;;  %v1478_v21 = vld [vmem:[#allocation3] sm:$0x3] }
 0x843   : > { %v1483_v7 = vrot.slane %v1478_v21, %v2766_v26 }
 0x844   : > { %v1434_v13 = vsel %vm551_vm0, %v1429_v8, 0.0  ;;  %v1437_v14 = vsel %vm551_vm0, %v1430_v12, 0.0 }
 0x845   : > { %1435 = vadd.xlane.f32.xlu1 %v1434_v13  ;;  %1438 = vadd.xlane.f32.xlu0 %v1437_v14 }
 0x8ca   : > { %v1433_v45 = vpop.xlane.xlu0 %1432 }
 0x8cb   : > { %v1440_v32 = vmul.f32 0.0125, %v1433_v45 }
 0x8cd   : > { %v1443_v46 = vadd.f32 1e-05, %v1440_v32 }
 0x8ce   : > { %v1436_v40 = vpop.xlane.xlu1 %1435  ;;  %v1439_v36 = vpop.xlane.xlu0 %1438 }
 0x8cf   : > { %2549 = vrsqrt.f32 %v1443_v46  ;;  %v1441_v47 = vmul.f32 0.0125, %v1436_v40  ;;  %v1442_v48 = vmul.f32 0.0125, %v1439_v36 }
 0x8d1   : > { %v1444_v49 = vadd.f32 1e-05, %v1441_v47  ;;  %v1445_v50 = vadd.f32 1e-05, %v1442_v48 }
 0x8d3   : > { %2551 = vrsqrt.f32 %v1444_v49 }
 0x8d4   : > { %2553 = vrsqrt.f32 %v1445_v50 }
 0x8dc   : > { %v2550_v10 = vpop.eup %2549 }
 0x8dd   : > { %v1449_v52 = vmul.f32 %v2550_v10, %v2934_v2  ;;  %v2514_v2 = vld [vmem:[%s3150_s7 + $0x50] sm:$0xff]  }
 0x8de   : > { %2277 = vmatprep.subr.bf16.mxu0 %v2514_v2 }
 0x8df   : > { %v1456_v30 = vmul.f32 %v1455_v5, %v1449_v52  ;;  %2278 = vmatpush3.bf16.msra.mxu0 %v2515_v16 }
 0x8e0   : > { %v2552_v53 = vpop.eup %2551 }
 0x8e1   : > { %v2554_v54 = vpop.eup %2553  ;;  %v1450_v57 = vmul.f32 %v2552_v53, %v2938_v6  ;;  %v1463_v59 = vadd.f32 %v1462_v55, %v1456_v30 }
 0x8e2   : > { %v1451_v4 = vmul.f32 %v2554_v54, %v2940_v17  ;;  %v1487_v17 = vrot.slane %v1478_v21, %v2807_v56 }
 0x8e3   : > { %v1457_v58 = vmul.f32 %v1455_v5, %v1450_v57 }
 0x8e4   : > { %v1458_v62 = vmul.f32 %v1455_v5, %v1451_v4 }
 0x8e5   : > { %v3017_v60 = vadd.f32 %v1462_v55, %v1457_v58 }
 0x8e6   : > { %v3022_v63 = vadd.f32 %v1462_v55, %v1458_v62 }
 0x8e7   : > { %v1466_v61 = vpack.c.bf16 %v3017_v60, %v1463_v59 }
 0x8e8   : > { %v1467_v0 = vpack.c.bf16 %v3022_v63, %v3022_v63 }
 0x8e9   : > { %2207 = vmatmul.mubr.msk.bf16.vlgmr.msra.gmra.mxu1 %vm551_vm0, %v1466_v61 }
 0x8ea   : > { %1588 = vmatprep.mubr.bf16.mxu1 %v2604_v1  ;;  %v2516_v1 = vld [vmem:[%s3150_s7 + $0x48] sm:$0xff]  }
 0x8eb   : > { %2279 = vmatprep.subr.bf16.mxu0 %v2516_v1 }
 0x8ec   : > { %2280 = vmatpush3.bf16.msra.mxu0 %v2517_v3 }
 0x8ed   : > { %2281 = vmatprep.subr.bf16.mxu0 %v2518_v11 }
 0x8f0   : > { %2282 = vmatpush3.bf16.msra.mxu0 %v2519_v9 }
 0x8f1   : > { %2208 = vmatmul.mubr.msk.bf16.gmra.mxu1 %vm551_vm0, %v1467_v0 }
 0x8f2   : > { %2408 = vmatprep.mubr.msk.bf16.mxu1 %vm2606_vm1, %v2605_v25 }
 0x9a9   : > { %v1580_v6 = vpop.f32.mrf.mxu1 }
 0x9aa   : > { %v1581_v15 = vadd.f32 %v1580_v6, %v1483_v7 }
 0x9ab   : > { %v1582_v8 = vpop.f32.mrf.mxu1 }
 0x9ac   : > { %v1583_v13 = vadd.f32 %v1582_v8, %v1487_v17  ;;  %v1597_v28 = vmax.f32 %v1581_v15, 0.0  ;;  %v2521_v8 = vld [vmem:[%s3151_s8 + $0x18] sm:$0xff]  }
 0x9ad   : > { %v1584_v12 = vpop.f32.mrf.mxu1 }
 0x9ae   : > { %v1585_v14 = vadd.f32 %v1584_v12, %v1483_v7  ;;  %v1598_v23 = vmax.f32 %v1583_v13, 0.0  ;;  %v2522_v12 = vld [vmem:[%s3151_s8 + $0x10] sm:$0xff]   ;;  %v2523_v13 = vld [vmem:[%s3151_s8 + $0x8] sm:$0xff]  }
 0x9af   : > { %v1586_v18 = vpop.f32.mrf.mxu1 }
 0x9b0   : > { %v1587_v19 = vadd.f32 %v1586_v18, %v1487_v17  ;;  %v1599_v20 = vmax.f32 %v1585_v14, 0.0  ;;  %v2524_v14 = vld [vmem:[%s3151_s8] sm:$0xff]  }
 0x9b1   : > { %v1590_v22 = vpop.f32.mrf.mxu1 }
 0x9b2   : > { %v1600_v27 = vmax.f32 %v1587_v19, 0.0  ;;  %v1603_v34 = vpack.c.bf16 %v1599_v20, %v1597_v28  ;;  %v1591_v35 = vadd.f32 %v1590_v22, %v1483_v7  ;;  %v2520_v7 = vld [vmem:[%s3151_s8 + $0x20] sm:$0xff]  }
 0x9b3   : > { %v1592_v29 = vpop.f32.mrf.mxu1  ;;  %2399 = vmatpush3.bf16.msra.mxu1 %v2520_v7 }
 0x9b4   : > { %v1604_v31 = vpack.c.bf16 %v1600_v27, %v1598_v23  ;;  %v1593_v33 = vadd.f32 %v1592_v29, %v1487_v17  ;;  %v1601_v39 = vmax.f32 %v1591_v35, 0.0  ;;  %2400 = vmatprep.subr.bf16.mxu1 %v2605_v25 }
 0x9b5   : > { %v1594_v56 = vpop.f32.mrf.mxu1 }
 0x9b6   : > { %v1602_v37 = vmax.f32 %v1593_v33, 0.0  ;;  %1771 = vmatprep.mubr.bf16.mxu0 %v1604_v31  ;;  %v1605_v41 = vpack.c.bf16 %v1601_v39, %v1601_v39  ;;  %v1831_v31 = vsub.s32 2, %v2761_v24  ;;  %v1838_v33 = vsub.s32 3, %v2761_v24 }
 0x9b7   : > { %v1595_v26 = vpop.f32.mrf.mxu1  ;;  %1772 = vmatmul.mubr.bf16.vlgmr.msra.gmra.mxu0 %v1603_v34  ;;  %2401 = vmatpush3.bf16.msra.mxu1 %v2521_v8 }
 0x9b8   : > { %v1606_v38 = vpack.c.bf16 %v1602_v37, %v1602_v37  ;;  %2402 = vmatprep.subr.bf16.mxu1 %v2605_v25  ;;  %v1832_v34 = vrot.slane %v2925_v51, %v1831_v31  ;;  %v1839_v56 = vrot.slane %v2925_v51, %v1838_v33  ;;  %v1883_v31 = vsub.s32 6, %v2761_v24 }
 0x9ba   : > { %1779 = vmatprep.mubr.bf16.mxu0 %v1606_v38  ;;  %v1884_v33 = vrot.slane %v2925_v51, %v1883_v31 }
 0x9bb   : > { %2403 = vmatpush3.bf16.msra.mxu1 %v2522_v12 }
 0x9bc   : > { %2404 = vmatprep.subr.bf16.mxu1 %v2605_v25 }
 0x9bf   : > { %1780 = vmatmul.mubr.bf16.gmra.mxu0 %v1605_v41  ;;  %2405 = vmatpush3.bf16.msra.mxu1 %v2523_v13 }
 0x9c0   : > { %2406 = vmatprep.subr.bf16.mxu1 %v2605_v25 }
 0x9c3   : > { %2407 = vmatpush3.bf16.msra.mxu1 %v2524_v14  ;;  %v1979_v14 = vld [vmem:[%s3152_s9 + $0x48] sm:$0xff] }
 0x9c4   : > { %2412 = vmatprep.subr.mxu1 %v2605_v25 }
 0xa77   : > { %v2283_v43 = vpop.f32.mrf.mxu0 }
 0xa79   : > { %v2284_v45 = vpop.f32.mrf.mxu0 }
 0xa7a   : > { %v2285_v32 = vadd.f32 %v2284_v45, %v2283_v43 }
 0xa7b   : > { %v2286_v46 = vpop.f32.mrf.mxu0 }
 0xa7c   : > { %v1774_v40 = vadd.f32 %v2285_v32, %v1642_v44 }
 0xa7d   : > { %v2287_v36 = vpop.f32.mrf.mxu0 }
 0xa7e   : > { %v2288_v47 = vadd.f32 %v2287_v36, %v2286_v46  ;;  %v1787_v48 = vadd.f32 %v1774_v40, %v1463_v59 }
 0xa7f   : > { %v2289_v49 = vpop.f32.mrf.mxu0 }
 0xa80   : > { %v1777_v50 = vadd.f32 %v2288_v47, %v1642_v44  ;;  %v1790_v10 = vsel %vm551_vm0, %v1787_v48, 0.0 }
 0xa81   : > { %1791 = vadd.xlane.f32.xlu1 %v1790_v10  ;;  %v2290_v5 = vpop.f32.mrf.mxu0 }
 0xa82   : > { %v2291_v52 = vadd.f32 %v2290_v5, %v2289_v49  ;;  %v1788_v53 = vadd.f32 %v1777_v50, %v3017_v60 }
 0xa83   : > { %v2292_v54 = vpop.f32.mrf.mxu0 }
 0xa84   : > { %v1782_v55 = vadd.f32 %v2291_v52, %v1642_v44  ;;  %v1793_v57 = vsel %vm551_vm0, %v1788_v53, 0.0 }
 0xa85   : > { %1794 = vadd.xlane.f32.xlu0 %v1793_v57  ;;  %v2293_v30 = vpop.f32.mrf.mxu0 }
 0xa86   : > { %v1789_v58 = vadd.f32 %v1782_v55, %v3022_v63 }
 0xa88   : > { %v1796_v4 = vsel %vm551_vm0, %v1789_v58, 0.0 }
 0xa89   : > { %1797 = vadd.xlane.f32.xlu1 %v1796_v4 }
 0xb0a   : > { %v1792_v59 = vpop.xlane.xlu1 %1791 }
 0xb0b   : > { %v1799_v61 = vmul.f32 0.0125, %v1792_v59 }
 0xb0d   : > { %v1802_v62 = vsub.f32 %v1787_v48, %v1799_v61 }
 0xb0e   : > { %v1795_v0 = vpop.xlane.xlu0 %1794 }
 0xb0f   : > { %v1800_v2 = vmul.f32 0.0125, %v1795_v0  ;;  %v1805_v16 = vmul.f32 %v1802_v62, %v1802_v62 }
 0xb11   : > { %v1803_v1 = vsub.f32 %v1788_v53, %v1800_v2  ;;  %v1808_v60 = vsel %vm551_vm0, %v1805_v16, 0.0 }
 0xb12   : > { %1809 = vadd.xlane.f32.xlu0 %v1808_v60  ;;  %v1798_v3 = vpop.xlane.xlu1 %1797 }
 0xb13   : > { %v1801_v11 = vmul.f32 0.0125, %v1798_v3  ;;  %v1806_v9 = vmul.f32 %v1803_v1, %v1803_v1 }
 0xb15   : > { %v1804_v21 = vsub.f32 %v1789_v58, %v1801_v11  ;;  %v1811_v6 = vsel %vm551_vm0, %v1806_v9, 0.0 }
 0xb16   : > { %1812 = vadd.xlane.f32.xlu1 %v1811_v6 }
 0xb17   : > { %v1807_v63 = vmul.f32 %v1804_v21, %v1804_v21 }
 0xb19   : > { %v1814_v17 = vsel %vm551_vm0, %v1807_v63, 0.0 }
 0xb1a   : > { %1815 = vadd.xlane.f32.xlu0 %v1814_v17 }
 0xb9b   : > { %v1810_v15 = vpop.xlane.xlu0 %1809 }
 0xb9c   : > { %v1817_v18 = vmul.f32 0.0125, %v1810_v15  ;;  %v1978_v15 = vld [vmem:[%s3152_s9 + $0x40] sm:$0xff] }
 0xb9e   : > { %v1820_v19 = vadd.f32 1e-05, %v1817_v18  ;;  %v1977_v18 = vld [vmem:[%s3152_s9 + $0x38] sm:$0xff] }
 0xb9f   : > { %v1813_v20 = vpop.xlane.xlu1 %1812 }
 0xba0   : > { %2555 = vrsqrt.f32 %v1820_v19  ;;  %v1818_v22 = vmul.f32 0.0125, %v1813_v20  ;;  %v1976_v19 = vld [vmem:[%s3152_s9 + $0x30] sm:$0xff]  ;;  %v1975_v20 = vld [vmem:[%s3152_s9 + $0x28] sm:$0xff] }
 0xba2   : > { %v1821_v23 = vadd.f32 1e-05, %v1818_v22  ;;  %v1974_v22 = vld [vmem:[%s3152_s9 + $0x20] sm:$0xff] }
 0xba3   : > { %v1816_v27 = vpop.xlane.xlu0 %1815 }
 0xba4   : > { %2557 = vrsqrt.f32 %v1821_v23  ;;  %v1819_v28 = vmul.f32 0.0125, %v1816_v27  ;;  %v1973_v23 = vld [vmem:[%s3152_s9 + $0x18] sm:$0xff]  ;;  %v1972_v27 = vld [vmem:[%s3152_s9 + $0x10] sm:$0xff] }
 0xba6   : > { %v1822_v29 = vadd.f32 1e-05, %v1819_v28  ;;  %v1971_v28 = vld [vmem:[%s3152_s9 + $0x8] sm:$0xff] }
 0xba8   : > { %2559 = vrsqrt.f32 %v1822_v29  ;;  %v1970_v29 = vld [vmem:[%s3152_s9] sm:$0xff] }
 0xbad   : > { %v2556_v35 = vpop.eup %2555 }
 0xbae   : > { %v1826_v37 = vmul.f32 %v2556_v35, %v1802_v62 }
 0xbb0   : > { %v1833_v26 = vmul.f32 %v1832_v34, %v1826_v37 }
 0xbb1   : > { %v2558_v38 = vpop.eup %2557 }
 0xbb2   : > { %v1840_v39 = vadd.f32 %v1839_v56, %v1833_v26  ;;  %v1827_v41 = vmul.f32 %v2558_v38, %v1803_v1 }
 0xbb4   : > { %v1843_v42 = vsel %vm551_vm0, %v1840_v39, 0.0  ;;  %v1834_v43 = vmul.f32 %v1832_v34, %v1827_v41 }
 0xbb5   : > { %v2560_v44 = vpop.eup %2559  ;;  %v1844_v45 = vrot.slane %v1843_v42, 4 }
 0xbb6   : > { %v1841_v32 = vadd.f32 %v1839_v56, %v1834_v43  ;;  %v1828_v46 = vmul.f32 %v2560_v44, %v1804_v21 }
 0xbb7   : > { %v1845_v40 = vadd.f32 %v1844_v45, %v1843_v42 }
 0xbb8   : > { %v1850_v36 = vsel %vm551_vm0, %v1841_v32, 0.0  ;;  %v1835_v47 = vmul.f32 %v1832_v34, %v1828_v46 }
 0xbb9   : > { %v1846_v48 = vrot.slane %v1845_v40, 2  ;;  %v1851_v49 = vrot.slane %v1850_v36, 4 }
 0xbba   : > { %v1842_v50 = vadd.f32 %v1839_v56, %v1835_v47 }
 0xbbb   : > { %v1847_v10 = vadd.f32 %v1846_v48, %v1845_v40  ;;  %v1852_v5 = vadd.f32 %v1851_v49, %v1850_v36 }
 0xbbc   : > { %v1857_v52 = vsel %vm551_vm0, %v1842_v50, 0.0 }
 0xbbd   : > { %v1848_v53 = vrot.slane %v1847_v10, 1  ;;  %v1853_v54 = vrot.slane %v1852_v5, 2  ;;  %v1858_v55 = vrot.slane %v1857_v52, 4 }
 0xbbf   : > { %v1854_v57 = vadd.f32 %v1853_v54, %v1852_v5  ;;  %v1859_v30 = vadd.f32 %v1858_v55, %v1857_v52  ;;  %v1849_v58 = vadd.f32 %v1848_v53, %v1847_v10 }
 0xbc1   : > { %v1855_v4 = vrot.slane %v1854_v57, 1  ;;  %v1860_v59 = vrot.slane %v1859_v30, 2  ;;  %v1865_v0 = vmul.f32 0.125, %v1849_v58 }
 0xbc3   : > { %v1856_v61 = vadd.f32 %v1855_v4, %v1854_v57  ;;  %v1861_v62 = vadd.f32 %v1860_v59, %v1859_v30  ;;  %v1868_v11 = vpack.c.bf16 %v1865_v0, %v1865_v0 }
 0xbc5   : > { %v1862_v2 = vrot.slane %v1861_v62, 1  ;;  %v1866_v16 = vmul.f32 0.125, %v1856_v61  ;;  %v1888_v17 = vunpack.c.l.b16 %v1868_v11 }
 0xbc7   : > { %v1863_v1 = vadd.f32 %v1862_v2, %v1861_v62  ;;  %v1869_v60 = vpack.c.bf16 %v1866_v16, %v1866_v16  ;;  %v2069_v3 = vsel %vm1891_vm5, %v1866_v16, %v1865_v0 }
 0xbc9   : > { %v1867_v9 = vmul.f32 0.125, %v1863_v1  ;;  %v1889_v21 = vunpack.c.l.b16 %v1869_v60 }
 0xbcb   : > { %v1870_v6 = vpack.c.bf16 %v1867_v9, %v1867_v9  ;;  %v3086_v63 = vsel %vm1893_vm6, %v1867_v9, %v2069_v3  ;;  %v1892_v8 = vsel %vm1891_vm5, %v1889_v21, %v1888_v17 }
 0xbcd   : > { %v1890_v7 = vunpack.c.l.b16 %v1870_v6 }
 0xbcf   : > { %v1894_v12 = vsel %vm1893_vm6, %v1890_v7, %v1892_v8 }
 0xbd0   : > { %v1895_v13 = vpack.c.b16 %v1894_v12, %v1894_v12 }
 0xbd2   : > { %2409 = vmatmul.mubr.msk.bf16.vlgmr.msra.gmra.mxu1 %vm551_vm0, %v1895_v13 }
 0xbd3   : > { %2413 = vmatpush3.msra.mxu1 %v1979_v14  ;;  %2432 = vmatprep.mubr.msk.f32.mxu1 %vm2606_vm1, %v2605_v25 }
 0xbd4   : > { %2414 = vmatprep.subr.mxu1 %v2605_v25 }
 0xbd5   : > { %2415 = vmatpush3.msra.mxu1 %v1978_v15 }
 0xbd6   : > { %2416 = vmatprep.subr.mxu1 %v2605_v25 }
 0xbd7   : > { %2417 = vmatpush3.msra.mxu1 %v1977_v18 }
 0xbd8   : > { %2418 = vmatprep.subr.mxu1 %v2605_v25 }
 0xbd9   : > { %2419 = vmatpush3.msra.mxu1 %v1976_v19 }
 0xbda   : > { %2420 = vmatprep.subr.mxu1 %v2605_v25 }
 0xbdb   : > { %2421 = vmatpush3.msra.mxu1 %v1975_v20 }
 0xbdc   : > { %2422 = vmatprep.subr.mxu1 %v2605_v25 }
 0xbdd   : > { %2423 = vmatpush3.msra.mxu1 %v1974_v22 }
 0xbde   : > { %2424 = vmatprep.subr.mxu1 %v2605_v25 }
 0xbdf   : > { %2425 = vmatpush3.msra.mxu1 %v1973_v23 }
 0xbe0   : > { %2426 = vmatprep.subr.mxu1 %v2605_v25 }
 0xbe1   : > { %2427 = vmatpush3.msra.mxu1 %v1972_v27 }
 0xbe2   : > { %2428 = vmatprep.subr.mxu1 %v2605_v25 }
 0xbe3   : > { %2429 = vmatpush3.msra.mxu1 %v1971_v28 }
 0xbe4   : > { %2430 = vmatprep.subr.mxu1 %v2605_v25  ;;  %v2231_v25 = vld [vmem:[#allocation2] ss:$0 sm:$0xff] }
 0xbe5   : > { %2431 = vmatpush3.msra.mxu1 %v1970_v29 }
 0xc92   : > { %v1963_v34 = vpop.f32.mrf.mxu1 }
 0xc93   : > { %v1964_v35 = vadd.f32 %v1963_v34, %v1884_v33 }
 0xc94   : > { %v2410_v56 = vpop.f32.mrf.mxu1 }
 0xc95   : > { %v1969_v37 = vmax.f32 %v1964_v35, 0.0 }
 0xc96   : > { %v1966_v26 = vpop.f32.mrf.mxu1 }
 0xc97   : > { %2433 = vmatmul.mubr.msk.f32.vlgmr.msra.gmra.mxu1 %vm551_vm0, %v1969_v37 }
 0xc98   : > { %v2411_v38 = vpop.f32.mrf.mxu1 }
 0xd57   : > { %v2056_v39 = vpop.f32.mrf.mxu1 }
 0xd58   : > { %v2057_v41 = vadd.f32 %v2231_v25, %v2056_v39 }
 0xd59   : > { %v2434_v42 = vpop.f32.mrf.mxu1 }
 0xd5a   : > { %v2233_v43 = vmul.f32 -1.442695, %v2057_v41 }
 0xd5c   : > { %2561 = vpow2.f32 %v2233_v43 }
 0xd69   : > { %v2562_v44 = vpop.eup %2561 }
 0xd6a   : > { %v2063_v24 = vadd.f32 1.0, %v2562_v44 }
 0xd6c   : > { %2563 = vrcp.f32 %v2063_v24 }
 0xd79   : > { %v2564_v51 = vpop.eup %2563 }
 0xd7a   : > { %2073 = vrot.lane.b32.xlu1 %v2564_v51, %s2613_s10 }
 0xdec   : > { %v2074_v45 = vpop.permute.xlu1 %2073 }
 0xded   : > { %v2076_v32 = vsel %vm551_vm0, %v3086_v63, %v2074_v45 }
 0xdee   : > { %v2078_v46 = vsel %vm2077_vm7, %v2076_v32, 0.0 }
 0xdef   : > { %2079 = vst [vmem:[%s447_s28] sm:$0x7] %v2078_v46 }
 0xdf0 PF: > { %s25_s23 = sadd.s32 1, %s2601_s23  }
 0xdf1   : > { %p22_p2 = scmp.ge.s32.totalorder %s25_s23, 4  }
 0xdf3   :  { %24 = sbr.rel (!%p22_p2) target bundleno = 4 (0x4), region = 106 }
 0xdf8   :  { %2099 = vsyncpa [#allocation4], 1 }
 0xdf9   :  { %2101 = vsyncpa [#allocation4 + $0x1], 1 }

</bundles_post_ra>
